<compile_context>
chip_gen: v7x
topology: tpu7x:2x2x1
jax: 0.10.0
libtpu: 0.0.40
codegen_flags: <defaults>
</compile_context>

<pallas_src>
import functools

import jax
import jax.numpy as jnp
from jax import lax
from jax.experimental import pallas as pl
from jax.experimental.pallas import tpu as pltpu


# ----------------------------------------------------------------------------
# Pallas kernel: the sequential 2-layer LSTM recurrence over one time tile.
# ----------------------------------------------------------------------------
def _lstm_recurrence_kernel(xp_ref,      # (TT, B, 4H)  precomputed x@Wih0 + b0
                            h0_ref,      # (2, B, H)    initial hidden
                            c0_ref,      # (2, B, H)    initial cell
                            whh0_ref,    # (H, 4H)      layer-0 recurrent weights
                            w1cat_ref,   # (2H, 4H)     layer-1 [Wih1; Whh1]
                            b1_ref,      # (1, 4H)      layer-1 bias (b_ih + b_hh)
                            h1_seq_ref,  # (TT, B, H)   per-step layer-1 hidden (out)
                            hn_ref,      # (2, B, H)    final hidden (out)
                            cn_ref,      # (2, B, H)    final cell (out)
                            state_ref,   # (4, B, H)    carried [h0,c0,h1,c1] scratch
                            hcat_ref):   # (B, 2H)      concat buffer scratch
    TT, B, G = xp_ref.shape            # G = 4*H
    H = whh0_ref.shape[0]

    # Initialize the carried state from the provided h0/c0 on the first tile.
    @pl.when(pl.program_id(0) == 0)
    def _init():
        state_ref[0] = h0_ref[0]
        state_ref[1] = c0_ref[0]
        state_ref[2] = h0_ref[1]
        state_ref[3] = c0_ref[1]

    # Weights / bias loaded (and bias broadcast) ONCE per tile, outside the loop.
    whh0 = whh0_ref[...]
    w1cat = w1cat_ref[...]
    b1b = jnp.broadcast_to(b1_ref[...], (B, G))

    def gate_math(gates, c_prev):
        # PyTorch gate order: [i | f | g | o] along the last axis.
        i_g = jax.nn.sigmoid(gates[:, 0 * H:1 * H])
        f_g = jax.nn.sigmoid(gates[:, 1 * H:2 * H])
        g_g = jnp.tanh(gates[:, 2 * H:3 * H])
        o_g = jax.nn.sigmoid(gates[:, 3 * H:4 * H])
        c_new = f_g * c_prev + i_g * g_g
        h_new = o_g * jnp.tanh(c_new)
        return h_new, c_new

    def step(t, carry):
        h_l0, c_l0, h_l1, c_l1 = carry
        # Layer 0: input projection was hoisted; only the recurrent dot remains.
        gates0 = xp_ref[t] + jnp.dot(h_l0, whh0,
                                     preferred_element_type=jnp.float32)
        h_l0, c_l0 = gate_math(gates0, c_l0)
        # Layer 1: fuse (h_l0 @ Wih1 + h_l1 @ Whh1) into one matmul against the
        # pre-concatenated weight; the activation "concat" is two cheap stores.
        hcat_ref[:, 0:H] = h_l0          # layer-1 input   (new h_l0)
        hcat_ref[:, H:2 * H] = h_l1      # layer-1 recurrent (previous h_l1)
        gates1 = jnp.dot(hcat_ref[...], w1cat,
                         preferred_element_type=jnp.float32) + b1b
        h_l1, c_l1 = gate_math(gates1, c_l1)
        # Buffer h_l1 per step; the fc_out GEMM is done in bulk outside.
        h1_seq_ref[t] = h_l1.astype(h1_seq_ref.dtype)
        return h_l0, c_l0, h_l1, c_l1

    carry0 = (state_ref[0], state_ref[1], state_ref[2], state_ref[3])
    h_l0, c_l0, h_l1, c_l1 = lax.fori_loop(0, TT, step, carry0,
                                           unroll=min(TT, 8))

    # Persist the carry for the next time tile.
    state_ref[0] = h_l0
    state_ref[1] = c_l0
    state_ref[2] = h_l1
    state_ref[3] = c_l1

    # Final hidden/cell outputs (constant-index resident block; last write wins).
    hn_ref[0] = h_l0.astype(hn_ref.dtype)
    hn_ref[1] = h_l1.astype(hn_ref.dtype)
    cn_ref[0] = c_l0.astype(cn_ref.dtype)
    cn_ref[1] = c_l1.astype(cn_ref.dtype)


# ----------------------------------------------------------------------------
# Wrapper
# ----------------------------------------------------------------------------
def _pick_time_tile(T, target):
    tt = max(1, min(T, target))
    while T % tt:
        tt -= 1
    return tt


@functools.partial(jax.jit, static_argnames=("time_tile",))
def latent_lstm_forward(x, params, hidden=None, *, time_tile=32):
    """Matches PyTorch LatentLSTM.forward.

    x:      (B, T, latent_dim)   batch_first, like nn.LSTM(batch_first=True)
    hidden: optional (h0, c0), each (num_layers=2, B, hidden_dim)
    returns (out, (h_n, c_n)):
        out (B, T, latent_dim), h_n/c_n (2, B, hidden_dim)
    """
    B, T, D_in = x.shape
    H = params["whh0"].shape[0]
    G = 4 * H
    L = 2

    if hidden is None:
        h0 = jnp.zeros((L, B, H), jnp.float32)
        c0 = jnp.zeros((L, B, H), jnp.float32)
    else:
        h0, c0 = hidden
        h0 = h0.astype(jnp.float32)
        c0 = c0.astype(jnp.float32)

    TT = _pick_time_tile(T, time_tile)
    grid = (T // TT,)

    # ---- Hoisted layer-0 input projection: one big MXU-efficient GEMM over all
    # T*B rows (XLA), produced time-major so the kernel indexes the lead axis.
    xp = jnp.einsum("btd,dg->tbg", x.astype(jnp.float32),
                    params["wih0"]) + params["b0"]          # (T, B, 4H)

    const3 = lambda t: (0, 0, 0)
    const2 = lambda t: (0, 0)

    grid_spec = pltpu.PrefetchScalarGridSpec(
        num_scalar_prefetch=0,
        grid=grid,
        in_specs=(
            pl.BlockSpec((TT, B, G), lambda t: (t, 0, 0)),   # xp: streamed tiles
            pl.BlockSpec((L, B, H), const3),                 # h0: resident
            pl.BlockSpec((L, B, H), const3),                 # c0: resident
            pl.BlockSpec((H, G), const2),                    # whh0: resident
            pl.BlockSpec((2 * H, G), const2),                # w1cat: resident
            pl.BlockSpec((1, G), const2),                    # b1: resident
        ),
        out_specs=(
            pl.BlockSpec((TT, B, H), lambda t: (t, 0, 0)),   # h1_seq tiles
            pl.BlockSpec((L, B, H), const3),                 # h_n (resident)
            pl.BlockSpec((L, B, H), const3),                 # c_n (resident)
        ),
        scratch_shapes=[
            pltpu.VMEM((4, B, H), jnp.float32),              # carried [h0,c0,h1,c1]
            pltpu.VMEM((B, 2 * H), jnp.float32),             # layer-1 concat buffer
        ],
    )

    # VMEM budget: double-buffered streamed blocks + resident weights/state.
    f32 = 4
    footprint = f32 * (
        2 * TT * B * (G + H)            # 2x buffers for xp and h1_seq tiles
        + H * G + 2 * H * G + G         # whh0, w1cat, b1
        + 4 * L * B * H                 # h0, c0, h_n, c_n blocks
        + 4 * B * H + 2 * B * H         # scratch
    )
    vmem_limit = int(min(64 * 1024 * 1024,
                         max(16 * 1024 * 1024, 2 * footprint)))

    h1_seq, h_n, c_n = pl.pallas_call(
        _lstm_recurrence_kernel,
        out_shape=(
            jax.ShapeDtypeStruct((T, B, H), jnp.float32),
            jax.ShapeDtypeStruct((L, B, H), jnp.float32),
            jax.ShapeDtypeStruct((L, B, H), jnp.float32),
        ),
        grid_spec=grid_spec,
        compiler_params=pltpu.CompilerParams(
            dimension_semantics=("arbitrary",),   # sequential time recurrence
            vmem_limit_bytes=vmem_limit,
        ),
    )(xp, h0, c0, params["whh0"], params["w1cat"], params["b1"])

    # ---- Hoisted fc_out head: one (T*B, H) @ (H, D_in) GEMM; the einsum also
    # folds the time-major -> batch-first transpose (no extra HBM transpose).
    out = jnp.einsum("tbh,hd->btd", h1_seq, params["wfc"]) + params["bfc"]
    return out, (h_n, c_n)


# ----------------------------------------------------------------------------
# Deterministic parameter init (PyTorch-style U(-1/sqrt(H), 1/sqrt(H)))
# ----------------------------------------------------------------------------
def init_params(key, latent_dim, hidden_dim):
    H = hidden_dim
    bound = 1.0 / jnp.sqrt(jnp.float32(H))
    ks = jax.random.split(key, 10)
    u = lambda k, shape: jax.random.uniform(k, shape, jnp.float32, -bound, bound)

    # Layer 0 (input size = latent_dim), PyTorch layout (4H, in)
    w_ih0 = u(ks[0], (4 * H, latent_dim))
    w_hh0 = u(ks[1], (4 * H, H))
    b_ih0 = u(ks[2], (4 * H,))
    b_hh0 = u(ks[3], (4 * H,))
    # Layer 1 (input size = hidden_dim)
    w_ih1 = u(ks[4], (4 * H, H))
    w_hh1 = u(ks[5], (4 * H, H))
    b_ih1 = u(ks[6], (4 * H,))
    b_hh1 = u(ks[7], (4 * H,))
    # fc_out: Linear(hidden_dim, latent_dim)
    w_fc = u(ks[8], (latent_dim, H))
    b_fc = u(ks[9], (latent_dim,))

    # Kernel-friendly layout: pre-transpose to (K, N), fold the two LSTM bias
    # vectors, and pre-concatenate layer-1 weights so the in-loop matmul count
    # is minimal (one fused (B,2H)@(2H,4H) dot per step for layer 1).
    return {
        "wih0": w_ih0.T,                                        # (D_in, 4H)
        "whh0": w_hh0.T,                                        # (H, 4H)
        "b0": (b_ih0 + b_hh0).reshape(1, 4 * H),                # (1, 4H)
        "w1cat": jnp.concatenate([w_ih1.T, w_hh1.T], axis=0),   # (2H, 4H)
        "b1": (b_ih1 + b_hh1).reshape(1, 4 * H),                # (1, 4H)
        "wfc": w_fc.T,                                          # (H, D_in)
        "bfc": b_fc.reshape(1, latent_dim),                     # (1, D_in)
    }


# ----------------------------------------------------------------------------
# Pure-JAX reference (same math, no Pallas) for a sanity check
# ----------------------------------------------------------------------------
def reference_forward(x, params, hidden=None):
    B, T, D_in = x.shape
    H = params["whh0"].shape[0]
    L = 2
    if hidden is None:
        h0 = jnp.zeros((L, B, H), jnp.float32)
        c0 = jnp.zeros((L, B, H), jnp.float32)
    else:
        h0, c0 = hidden
    wih1 = params["w1cat"][:H]
    whh1 = params["w1cat"][H:]

    def cell(x_t, h, c, wih, whh, b):
        g = x_t @ wih + h @ whh + b
        i = jax.nn.sigmoid(g[:, 0 * H:1 * H])
        f = jax.nn.sigmoid(g[:, 1 * H:2 * H])
        gg = jnp.tanh(g[:, 2 * H:3 * H])
        o = jax.nn.sigmoid(g[:, 3 * H:4 * H])
        c_new = f * c + i * gg
        return o * jnp.tanh(c_new), c_new

    def step(carry, x_t):
        h_l0, c_l0, h_l1, c_l1 = carry
        h_l0, c_l0 = cell(x_t, h_l0, c_l0, params["wih0"], params["whh0"], params["b0"])
        h_l1, c_l1 = cell(h_l0, h_l1, c_l1, wih1, whh1, params["b1"])
        y = h_l1 @ params["wfc"] + params["bfc"]
        return (h_l0, c_l0, h_l1, c_l1), y

    carry, ys = lax.scan(step, (h0[0], c0[0], h0[1], c0[1]),
                         jnp.transpose(x, (1, 0, 2)))
    h_l0, c_l0, h_l1, c_l1 = carry
    out = jnp.transpose(ys, (1, 0, 2))
    return out, (jnp.stack([h_l0, h_l1]), jnp.stack([c_l0, c_l1]))


# ----------------------------------------------------------------------------
if __name__ == "__main__":
    B, T = 2, 8
    LATENT_DIM = 16      # stands in for encodec codebook_size (1024) at small scale
    HIDDEN_DIM = 32

    key = jax.random.PRNGKey(0)
    k_x, k_p, k_h, k_c = jax.random.split(key, 4)
    x = jax.random.normal(k_x, (B, T, LATENT_DIM), jnp.float32)
    params = init_params(k_p, LATENT_DIM, HIDDEN_DIM)

    # hidden=None path; time_tile=4 -> grid of 2 so the cross-tile state carry
    # is actually exercised.
    out, (h_n, c_n) = latent_lstm_forward(x, params, time_tile=4)
    jax.block_until_ready((out, h_n, c_n))

    ref_out, (ref_h, ref_c) = reference_forward(x, params)
    assert out.shape == (B, T, LATENT_DIM)
    assert h_n.shape == (2, B, HIDDEN_DIM) and c_n.shape == (2, B, HIDDEN_DIM)
    assert jnp.allclose(out, ref_out, atol=1e-4, rtol=1e-4)
    assert jnp.allclose(h_n, ref_h, atol=1e-4, rtol=1e-4)
    assert jnp.allclose(c_n, ref_c, atol=1e-4, rtol=1e-4)

    # Explicit initial-hidden path.
    h0 = 0.1 * jax.random.normal(k_h, (2, B, HIDDEN_DIM), jnp.float32)
    c0 = 0.1 * jax.random.normal(k_c, (2, B, HIDDEN_DIM), jnp.float32)
    out2, (h_n2, c_n2) = latent_lstm_forward(x, params, (h0, c0), time_tile=4)
    jax.block_until_ready((out2, h_n2, c_n2))

    ref_out2, (ref_h2, ref_c2) = reference_forward(x, params, (h0, c0))
    assert jnp.allclose(out2, ref_out2, atol=1e-4, rtol=1e-4)
    assert jnp.allclose(h_n2, ref_h2, atol=1e-4, rtol=1e-4)
    assert jnp.allclose(c_n2, ref_c2, atol=1e-4, rtol=1e-4)

    print("KERNEL_OK")
</pallas_src>

<mosaic_0001>
module attributes {stable_mosaic.version = 11 : i64} {
  func.func @_lstm_recurrence_kernel(%arg0: i32, %arg1: memref<4x2x128xf32, #tpu.memory_space<vmem>>, %arg2: memref<2x2x32xf32, #tpu.memory_space<vmem>>, %arg3: memref<2x2x32xf32, #tpu.memory_space<vmem>>, %arg4: memref<32x128xf32, #tpu.memory_space<vmem>>, %arg5: memref<64x128xf32, #tpu.memory_space<vmem>>, %arg6: memref<1x128xf32, #tpu.memory_space<vmem>>, %arg7: memref<4x2x32xf32, #tpu.memory_space<vmem>>, %arg8: memref<2x2x32xf32, #tpu.memory_space<vmem>>, %arg9: memref<2x2x32xf32, #tpu.memory_space<vmem>>, %arg10: memref<4x2x32xf32, #tpu.memory_space<vmem>>, %arg11: memref<2x64xf32, #tpu.memory_space<vmem>>) attributes {dimension_semantics = [#tpu.dimension_semantics<arbitrary>], iteration_bounds = array<i64: 2>, scalar_prefetch = 0 : i64, scratch_operands = 2 : i64, tpu.core_type = #tpu.core_type<tc>, window_params = [{transform_indices = @transform_0, window_bounds = array<i64: 4, 2, 128>}, {pipeline_mode = #tpu.pipeline_mode<synchronous>, transform_indices = @transform_1, window_bounds = array<i64: 2, 2, 32>}, {pipeline_mode = #tpu.pipeline_mode<synchronous>, transform_indices = @transform_2, window_bounds = array<i64: 2, 2, 32>}, {pipeline_mode = #tpu.pipeline_mode<synchronous>, transform_indices = @transform_3, window_bounds = array<i64: 32, 128>}, {pipeline_mode = #tpu.pipeline_mode<synchronous>, transform_indices = @transform_4, window_bounds = array<i64: 64, 128>}, {pipeline_mode = #tpu.pipeline_mode<synchronous>, transform_indices = @transform_5, window_bounds = array<i64: 1, 128>}, {transform_indices = @transform_6, window_bounds = array<i64: 4, 2, 32>}, {pipeline_mode = #tpu.pipeline_mode<synchronous>, transform_indices = @transform_7, window_bounds = array<i64: 2, 2, 32>}, {pipeline_mode = #tpu.pipeline_mode<synchronous>, transform_indices = @transform_8, window_bounds = array<i64: 2, 2, 32>}]} {
    %c0_i32 = arith.constant 0 : i32
    %0 = arith.cmpi eq, %arg0, %c0_i32 : i32
    %1 = arith.extui %0 : i1 to i32
    %c0_i32_0 = arith.constant 0 : i32
    %2 = arith.cmpi ne, %1, %c0_i32_0 : i32
    scf.if %2 {
      %c0_110 = arith.constant 0 : index
      %c0_111 = arith.constant 0 : index
      %c0_112 = arith.constant 0 : index
      %296 = vector.load %arg2[%c0_110, %c0_111, %c0_112] : memref<2x2x32xf32, #tpu.memory_space<vmem>>, vector<1x2x32xf32>
      %297 = vector.shape_cast %296 : vector<1x2x32xf32> to vector<2x32xf32>
      %c0_113 = arith.constant 0 : index
      %c0_114 = arith.constant 0 : index
      %c0_115 = arith.constant 0 : index
      %298 = vector.load %arg10[%c0_113, %c0_114, %c0_115] : memref<4x2x32xf32, #tpu.memory_space<vmem>>, vector<1x2x32xf32>
      %299 = vector.shape_cast %298 : vector<1x2x32xf32> to vector<2x32xf32>
      %300 = vector.shape_cast %297 : vector<2x32xf32> to vector<1x2x32xf32>
      tpu.vector_store %arg10[%c0_113, %c0_114, %c0_115], %300 {strides = array<i32>} : memref<4x2x32xf32, #tpu.memory_space<vmem>>, vector<1x2x32xf32>,
      %c0_116 = arith.constant 0 : index
      %c0_117 = arith.constant 0 : index
      %c0_118 = arith.constant 0 : index
      %301 = vector.load %arg3[%c0_116, %c0_117, %c0_118] : memref<2x2x32xf32, #tpu.memory_space<vmem>>, vector<1x2x32xf32>
      %302 = vector.shape_cast %301 : vector<1x2x32xf32> to vector<2x32xf32>
      %c1_119 = arith.constant 1 : index
      %c0_120 = arith.constant 0 : index
      %c0_121 = arith.constant 0 : index
      %303 = vector.load %arg10[%c1_119, %c0_120, %c0_121] : memref<4x2x32xf32, #tpu.memory_space<vmem>>, vector<1x2x32xf32>
      %304 = vector.shape_cast %303 : vector<1x2x32xf32> to vector<2x32xf32>
      %305 = vector.shape_cast %302 : vector<2x32xf32> to vector<1x2x32xf32>
      tpu.vector_store %arg10[%c1_119, %c0_120, %c0_121], %305 {strides = array<i32>} : memref<4x2x32xf32, #tpu.memory_space<vmem>>, vector<1x2x32xf32>,
      %c1_122 = arith.constant 1 : index
      %c0_123 = arith.constant 0 : index
      %c0_124 = arith.constant 0 : index
      %306 = vector.load %arg2[%c1_122, %c0_123, %c0_124] : memref<2x2x32xf32, #tpu.memory_space<vmem>>, vector<1x2x32xf32>
      %307 = vector.shape_cast %306 : vector<1x2x32xf32> to vector<2x32xf32>
      %c2_125 = arith.constant 2 : index
      %c0_126 = arith.constant 0 : index
      %c0_127 = arith.constant 0 : index
      %308 = vector.load %arg10[%c2_125, %c0_126, %c0_127] : memref<4x2x32xf32, #tpu.memory_space<vmem>>, vector<1x2x32xf32>
      %309 = vector.shape_cast %308 : vector<1x2x32xf32> to vector<2x32xf32>
      %310 = vector.shape_cast %307 : vector<2x32xf32> to vector<1x2x32xf32>
      tpu.vector_store %arg10[%c2_125, %c0_126, %c0_127], %310 {strides = array<i32>} : memref<4x2x32xf32, #tpu.memory_space<vmem>>, vector<1x2x32xf32>,
      %c1_128 = arith.constant 1 : index
      %c0_129 = arith.constant 0 : index
      %c0_130 = arith.constant 0 : index
      %311 = vector.load %arg3[%c1_128, %c0_129, %c0_130] : memref<2x2x32xf32, #tpu.memory_space<vmem>>, vector<1x2x32xf32>
      %312 = vector.shape_cast %311 : vector<1x2x32xf32> to vector<2x32xf32>
      %c3_131 = arith.constant 3 : index
      %c0_132 = arith.constant 0 : index
      %c0_133 = arith.constant 0 : index
      %313 = vector.load %arg10[%c3_131, %c0_132, %c0_133] : memref<4x2x32xf32, #tpu.memory_space<vmem>>, vector<1x2x32xf32>
      %314 = vector.shape_cast %313 : vector<1x2x32xf32> to vector<2x32xf32>
      %315 = vector.shape_cast %312 : vector<2x32xf32> to vector<1x2x32xf32>
      tpu.vector_store %arg10[%c3_131, %c0_132, %c0_133], %315 {strides = array<i32>} : memref<4x2x32xf32, #tpu.memory_space<vmem>>, vector<1x2x32xf32>,
    } else {
    }
    %c0 = arith.constant 0 : index
    %c0_1 = arith.constant 0 : index
    %3 = vector.load %arg4[%c0, %c0_1] : memref<32x128xf32, #tpu.memory_space<vmem>>, vector<32x128xf32>
    %c0_2 = arith.constant 0 : index
    %c0_3 = arith.constant 0 : index
    %4 = vector.load %arg5[%c0_2, %c0_3] : memref<64x128xf32, #tpu.memory_space<vmem>>, vector<64x128xf32>
    %c0_4 = arith.constant 0 : index
    %c0_5 = arith.constant 0 : index
    %5 = vector.load %arg6[%c0_4, %c0_5] : memref<1x128xf32, #tpu.memory_space<vmem>>, vector<1x128xf32>
    %6 = vector.shape_cast %5 : vector<1x128xf32> to vector<1x128xf32>
    %7 = vector.broadcast %6 : vector<1x128xf32> to vector<2x128xf32>
    %c0_6 = arith.constant 0 : index
    %c0_7 = arith.constant 0 : index
    %c0_8 = arith.constant 0 : index
    %8 = vector.load %arg10[%c0_6, %c0_7, %c0_8] : memref<4x2x32xf32, #tpu.memory_space<vmem>>, vector<1x2x32xf32>
    %9 = vector.shape_cast %8 : vector<1x2x32xf32> to vector<2x32xf32>
    %c1 = arith.constant 1 : index
    %c0_9 = arith.constant 0 : index
    %c0_10 = arith.constant 0 : index
    %10 = vector.load %arg10[%c1, %c0_9, %c0_10] : memref<4x2x32xf32, #tpu.memory_space<vmem>>, vector<1x2x32xf32>
    %11 = vector.shape_cast %10 : vector<1x2x32xf32> to vector<2x32xf32>
    %c2 = arith.constant 2 : index
    %c0_11 = arith.constant 0 : index
    %c0_12 = arith.constant 0 : index
    %12 = vector.load %arg10[%c2, %c0_11, %c0_12] : memref<4x2x32xf32, #tpu.memory_space<vmem>>, vector<1x2x32xf32>
    %13 = vector.shape_cast %12 : vector<1x2x32xf32> to vector<2x32xf32>
    %c3 = arith.constant 3 : index
    %c0_13 = arith.constant 0 : index
    %c0_14 = arith.constant 0 : index
    %14 = vector.load %arg10[%c3, %c0_13, %c0_14] : memref<4x2x32xf32, #tpu.memory_space<vmem>>, vector<1x2x32xf32>
    %15 = vector.shape_cast %14 : vector<1x2x32xf32> to vector<2x32xf32>
    %c0_i32_15 = arith.constant 0 : i32
    %16 = arith.index_cast %c0_i32_15 : i32 to index
    %c0_16 = arith.constant 0 : index
    %c0_17 = arith.constant 0 : index
    %17 = vector.load %arg1[%16, %c0_16, %c0_17] : memref<4x2x128xf32, #tpu.memory_space<vmem>>, vector<1x2x128xf32>
    %18 = vector.shape_cast %17 : vector<1x2x128xf32> to vector<2x128xf32>
    %cst = arith.constant dense<0.000000e+00> : vector<2x128xf32>
    %19 = tpu.matmul %9, %3, %cst {dimension_numbers = #tpu.dot_dimension_numbers<[1], [0], [0], [1], [0, 0, 1, 1], [], []>} : vector<2x32xf32>, vector<32x128xf32>, vector<2x128xf32> -> vector<2x128xf32>
    %20 = arith.addf %18, %19 : vector<2x128xf32>
    %21 = vector.extract_strided_slice %20 {offsets = [0, 0], sizes = [2, 32], strides = [1, 1]} : vector<2x128xf32> to vector<2x32xf32>
    %22 = arith.negf %21 : vector<2x32xf32>
    %23 = math.exp %22 : vector<2x32xf32>
    %cst_18 = arith.constant 1.000000e+00 : f32
    %24 = vector.broadcast %cst_18 : f32 to vector<2x32xf32>
    %25 = arith.addf %24, %23 : vector<2x32xf32>
    %26 = arith.divf %24, %25 : vector<2x32xf32>
    %27 = vector.extract_strided_slice %20 {offsets = [0, 32], sizes = [2, 32], strides = [1, 1]} : vector<2x128xf32> to vector<2x32xf32>
    %28 = arith.negf %27 : vector<2x32xf32>
    %29 = math.exp %28 : vector<2x32xf32>
    %cst_19 = arith.constant 1.000000e+00 : f32
    %30 = vector.broadcast %cst_19 : f32 to vector<2x32xf32>
    %31 = arith.addf %30, %29 : vector<2x32xf32>
    %32 = arith.divf %30, %31 : vector<2x32xf32>
    %33 = vector.extract_strided_slice %20 {offsets = [0, 64], sizes = [2, 32], strides = [1, 1]} : vector<2x128xf32> to vector<2x32xf32>
    %34 = math.tanh %33 : vector<2x32xf32>
    %35 = vector.extract_strided_slice %20 {offsets = [0, 96], sizes = [2, 32], strides = [1, 1]} : vector<2x128xf32> to vector<2x32xf32>
    %36 = arith.negf %35 : vector<2x32xf32>
    %37 = math.exp %36 : vector<2x32xf32>
    %cst_20 = arith.constant 1.000000e+00 : f32
    %38 = vector.broadcast %cst_20 : f32 to vector<2x32xf32>
    %39 = arith.addf %38, %37 : vector<2x32xf32>
    %40 = arith.divf %38, %39 : vector<2x32xf32>
    %41 = arith.mulf %32, %11 : vector<2x32xf32>
    %42 = arith.mulf %26, %34 : vector<2x32xf32>
    %43 = arith.addf %41, %42 : vector<2x32xf32>
    %44 = math.tanh %43 : vector<2x32xf32>
    %45 = arith.mulf %40, %44 : vector<2x32xf32>
    %c0_21 = arith.constant 0 : index
    %c0_22 = arith.constant 0 : index
    %46 = vector.load %arg11[%c0_21, %c0_22] : memref<2x64xf32, #tpu.memory_space<vmem>>, vector<2x32xf32>
    tpu.vector_store %arg11[%c0_21, %c0_22], %45 {strides = array<i32>} : memref<2x64xf32, #tpu.memory_space<vmem>>, vector<2x32xf32>,
    %c0_23 = arith.constant 0 : index
    %c32 = arith.constant 32 : index
    %47 = vector.load %arg11[%c0_23, %c32] : memref<2x64xf32, #tpu.memory_space<vmem>>, vector<2x32xf32>
    tpu.vector_store %arg11[%c0_23, %c32], %13 {strides = array<i32>} : memref<2x64xf32, #tpu.memory_space<vmem>>, vector<2x32xf32>,
    %c0_24 = arith.constant 0 : index
    %c0_25 = arith.constant 0 : index
    %48 = vector.load %arg11[%c0_24, %c0_25] : memref<2x64xf32, #tpu.memory_space<vmem>>, vector<2x64xf32>
    %cst_26 = arith.constant dense<0.000000e+00> : vector<2x128xf32>
    %49 = tpu.matmul %48, %4, %cst_26 {dimension_numbers = #tpu.dot_dimension_numbers<[1], [0], [0], [1], [0, 0, 1, 1], [], []>} : vector<2x64xf32>, vector<64x128xf32>, vector<2x128xf32> -> vector<2x128xf32>
    %50 = arith.addf %49, %7 : vector<2x128xf32>
    %51 = vector.extract_strided_slice %50 {offsets = [0, 0], sizes = [2, 32], strides = [1, 1]} : vector<2x128xf32> to vector<2x32xf32>
    %52 = arith.negf %51 : vector<2x32xf32>
    %53 = math.exp %52 : vector<2x32xf32>
    %cst_27 = arith.constant 1.000000e+00 : f32
    %54 = vector.broadcast %cst_27 : f32 to vector<2x32xf32>
    %55 = arith.addf %54, %53 : vector<2x32xf32>
    %56 = arith.divf %54, %55 : vector<2x32xf32>
    %57 = vector.extract_strided_slice %50 {offsets = [0, 32], sizes = [2, 32], strides = [1, 1]} : vector<2x128xf32> to vector<2x32xf32>
    %58 = arith.negf %57 : vector<2x32xf32>
    %59 = math.exp %58 : vector<2x32xf32>
    %cst_28 = arith.constant 1.000000e+00 : f32
    %60 = vector.broadcast %cst_28 : f32 to vector<2x32xf32>
    %61 = arith.addf %60, %59 : vector<2x32xf32>
    %62 = arith.divf %60, %61 : vector<2x32xf32>
    %63 = vector.extract_strided_slice %50 {offsets = [0, 64], sizes = [2, 32], strides = [1, 1]} : vector<2x128xf32> to vector<2x32xf32>
    %64 = math.tanh %63 : vector<2x32xf32>
    %65 = vector.extract_strided_slice %50 {offsets = [0, 96], sizes = [2, 32], strides = [1, 1]} : vector<2x128xf32> to vector<2x32xf32>
    %66 = arith.negf %65 : vector<2x32xf32>
    %67 = math.exp %66 : vector<2x32xf32>
    %cst_29 = arith.constant 1.000000e+00 : f32
    %68 = vector.broadcast %cst_29 : f32 to vector<2x32xf32>
    %69 = arith.addf %68, %67 : vector<2x32xf32>
    %70 = arith.divf %68, %69 : vector<2x32xf32>
    %71 = arith.mulf %62, %15 : vector<2x32xf32>
    %72 = arith.mulf %56, %64 : vector<2x32xf32>
    %73 = arith.addf %71, %72 : vector<2x32xf32>
    %74 = math.tanh %73 : vector<2x32xf32>
    %75 = arith.mulf %70, %74 : vector<2x32xf32>
    %76 = arith.index_cast %c0_i32_15 : i32 to index
    %c0_30 = arith.constant 0 : index
    %c0_31 = arith.constant 0 : index
    %77 = vector.load %arg7[%76, %c0_30, %c0_31] : memref<4x2x32xf32, #tpu.memory_space<vmem>>, vector<1x2x32xf32>
    %78 = vector.shape_cast %77 : vector<1x2x32xf32> to vector<2x32xf32>
    %79 = vector.shape_cast %75 : vector<2x32xf32> to vector<1x2x32xf32>
    tpu.vector_store %arg7[%76, %c0_30, %c0_31], %79 {strides = array<i32>} : memref<4x2x32xf32, #tpu.memory_space<vmem>>, vector<1x2x32xf32>,
    %c1_i32 = arith.constant 1 : i32
    %80 = arith.index_cast %c1_i32 : i32 to index
    %c0_32 = arith.constant 0 : index
    %c0_33 = arith.constant 0 : index
    %81 = vector.load %arg1[%80, %c0_32, %c0_33] : memref<4x2x128xf32, #tpu.memory_space<vmem>>, vector<1x2x128xf32>
    %82 = vector.shape_cast %81 : vector<1x2x128xf32> to vector<2x128xf32>
    %cst_34 = arith.constant dense<0.000000e+00> : vector<2x128xf32>
    %83 = tpu.matmul %45, %3, %cst_34 {dimension_numbers = #tpu.dot_dimension_numbers<[1], [0], [0], [1], [0, 0, 1, 1], [], []>} : vector<2x32xf32>, vector<32x128xf32>, vector<2x128xf32> -> vector<2x128xf32>
    %84 = arith.addf %82, %83 : vector<2x128xf32>
    %85 = vector.extract_strided_slice %84 {offsets = [0, 0], sizes = [2, 32], strides = [1, 1]} : vector<2x128xf32> to vector<2x32xf32>
    %86 = arith.negf %85 : vector<2x32xf32>
    %87 = math.exp %86 : vector<2x32xf32>
    %cst_35 = arith.constant 1.000000e+00 : f32
    %88 = vector.broadcast %cst_35 : f32 to vector<2x32xf32>
    %89 = arith.addf %88, %87 : vector<2x32xf32>
    %90 = arith.divf %88, %89 : vector<2x32xf32>
    %91 = vector.extract_strided_slice %84 {offsets = [0, 32], sizes = [2, 32], strides = [1, 1]} : vector<2x128xf32> to vector<2x32xf32>
    %92 = arith.negf %91 : vector<2x32xf32>
    %93 = math.exp %92 : vector<2x32xf32>
    %cst_36 = arith.constant 1.000000e+00 : f32
    %94 = vector.broadcast %cst_36 : f32 to vector<2x32xf32>
    %95 = arith.addf %94, %93 : vector<2x32xf32>
    %96 = arith.divf %94, %95 : vector<2x32xf32>
    %97 = vector.extract_strided_slice %84 {offsets = [0, 64], sizes = [2, 32], strides = [1, 1]} : vector<2x128xf32> to vector<2x32xf32>
    %98 = math.tanh %97 : vector<2x32xf32>
    %99 = vector.extract_strided_slice %84 {offsets = [0, 96], sizes = [2, 32], strides = [1, 1]} : vector<2x128xf32> to vector<2x32xf32>
    %100 = arith.negf %99 : vector<2x32xf32>
    %101 = math.exp %100 : vector<2x32xf32>
    %cst_37 = arith.constant 1.000000e+00 : f32
    %102 = vector.broadcast %cst_37 : f32 to vector<2x32xf32>
    %103 = arith.addf %102, %101 : vector<2x32xf32>
    %104 = arith.divf %102, %103 : vector<2x32xf32>
    %105 = arith.mulf %96, %43 : vector<2x32xf32>
    %106 = arith.mulf %90, %98 : vector<2x32xf32>
    %107 = arith.addf %105, %106 : vector<2x32xf32>
    %108 = math.tanh %107 : vector<2x32xf32>
    %109 = arith.mulf %104, %108 : vector<2x32xf32>
    %c0_38 = arith.constant 0 : index
    %c0_39 = arith.constant 0 : index
    %110 = vector.load %arg11[%c0_38, %c0_39] : memref<2x64xf32, #tpu.memory_space<vmem>>, vector<2x32xf32>
    tpu.vector_store %arg11[%c0_38, %c0_39], %109 {strides = array<i32>} : memref<2x64xf32, #tpu.memory_space<vmem>>, vector<2x32xf32>,
    %c0_40 = arith.constant 0 : index
    %c32_41 = arith.constant 32 : index
    %111 = vector.load %arg11[%c0_40, %c32_41] : memref<2x64xf32, #tpu.memory_space<vmem>>, vector<2x32xf32>
    tpu.vector_store %arg11[%c0_40, %c32_41], %75 {strides = array<i32>} : memref<2x64xf32, #tpu.memory_space<vmem>>, vector<2x32xf32>,
    %c0_42 = arith.constant 0 : index
    %c0_43 = arith.constant 0 : index
    %112 = vector.load %arg11[%c0_42, %c0_43] : memref<2x64xf32, #tpu.memory_space<vmem>>, vector<2x64xf32>
    %cst_44 = arith.constant dense<0.000000e+00> : vector<2x128xf32>
    %113 = tpu.matmul %112, %4, %cst_44 {dimension_numbers = #tpu.dot_dimension_numbers<[1], [0], [0], [1], [0, 0, 1, 1], [], []>} : vector<2x64xf32>, vector<64x128xf32>, vector<2x128xf32> -> vector<2x128xf32>
    %114 = arith.addf %113, %7 : vector<2x128xf32>
    %115 = vector.extract_strided_slice %114 {offsets = [0, 0], sizes = [2, 32], strides = [1, 1]} : vector<2x128xf32> to vector<2x32xf32>
    %116 = arith.negf %115 : vector<2x32xf32>
    %117 = math.exp %116 : vector<2x32xf32>
    %cst_45 = arith.constant 1.000000e+00 : f32
    %118 = vector.broadcast %cst_45 : f32 to vector<2x32xf32>
    %119 = arith.addf %118, %117 : vector<2x32xf32>
    %120 = arith.divf %118, %119 : vector<2x32xf32>
    %121 = vector.extract_strided_slice %114 {offsets = [0, 32], sizes = [2, 32], strides = [1, 1]} : vector<2x128xf32> to vector<2x32xf32>
    %122 = arith.negf %121 : vector<2x32xf32>
    %123 = math.exp %122 : vector<2x32xf32>
    %cst_46 = arith.constant 1.000000e+00 : f32
    %124 = vector.broadcast %cst_46 : f32 to vector<2x32xf32>
    %125 = arith.addf %124, %123 : vector<2x32xf32>
    %126 = arith.divf %124, %125 : vector<2x32xf32>
    %127 = vector.extract_strided_slice %114 {offsets = [0, 64], sizes = [2, 32], strides = [1, 1]} : vector<2x128xf32> to vector<2x32xf32>
    %128 = math.tanh %127 : vector<2x32xf32>
    %129 = vector.extract_strided_slice %114 {offsets = [0, 96], sizes = [2, 32], strides = [1, 1]} : vector<2x128xf32> to vector<2x32xf32>
    %130 = arith.negf %129 : vector<2x32xf32>
    %131 = math.exp %130 : vector<2x32xf32>
    %cst_47 = arith.constant 1.000000e+00 : f32
    %132 = vector.broadcast %cst_47 : f32 to vector<2x32xf32>
    %133 = arith.addf %132, %131 : vector<2x32xf32>
    %134 = arith.divf %132, %133 : vector<2x32xf32>
    %135 = arith.mulf %126, %73 : vector<2x32xf32>
    %136 = arith.mulf %120, %128 : vector<2x32xf32>
    %137 = arith.addf %135, %136 : vector<2x32xf32>
    %138 = math.tanh %137 : vector<2x32xf32>
    %139 = arith.mulf %134, %138 : vector<2x32xf32>
    %140 = arith.index_cast %c1_i32 : i32 to index
    %c0_48 = arith.constant 0 : index
    %c0_49 = arith.constant 0 : index
    %141 = vector.load %arg7[%140, %c0_48, %c0_49] : memref<4x2x32xf32, #tpu.memory_space<vmem>>, vector<1x2x32xf32>
    %142 = vector.shape_cast %141 : vector<1x2x32xf32> to vector<2x32xf32>
    %143 = vector.shape_cast %139 : vector<2x32xf32> to vector<1x2x32xf32>
    tpu.vector_store %arg7[%140, %c0_48, %c0_49], %143 {strides = array<i32>} : memref<4x2x32xf32, #tpu.memory_space<vmem>>, vector<1x2x32xf32>,
    %c2_i32 = arith.constant 2 : i32
    %144 = arith.index_cast %c2_i32 : i32 to index
    %c0_50 = arith.constant 0 : index
    %c0_51 = arith.constant 0 : index
    %145 = vector.load %arg1[%144, %c0_50, %c0_51] : memref<4x2x128xf32, #tpu.memory_space<vmem>>, vector<1x2x128xf32>
    %146 = vector.shape_cast %145 : vector<1x2x128xf32> to vector<2x128xf32>
    %cst_52 = arith.constant dense<0.000000e+00> : vector<2x128xf32>
    %147 = tpu.matmul %109, %3, %cst_52 {dimension_numbers = #tpu.dot_dimension_numbers<[1], [0], [0], [1], [0, 0, 1, 1], [], []>} : vector<2x32xf32>, vector<32x128xf32>, vector<2x128xf32> -> vector<2x128xf32>
    %148 = arith.addf %146, %147 : vector<2x128xf32>
    %149 = vector.extract_strided_slice %148 {offsets = [0, 0], sizes = [2, 32], strides = [1, 1]} : vector<2x128xf32> to vector<2x32xf32>
    %150 = arith.negf %149 : vector<2x32xf32>
    %151 = math.exp %150 : vector<2x32xf32>
    %cst_53 = arith.constant 1.000000e+00 : f32
    %152 = vector.broadcast %cst_53 : f32 to vector<2x32xf32>
    %153 = arith.addf %152, %151 : vector<2x32xf32>
    %154 = arith.divf %152, %153 : vector<2x32xf32>
    %155 = vector.extract_strided_slice %148 {offsets = [0, 32], sizes = [2, 32], strides = [1, 1]} : vector<2x128xf32> to vector<2x32xf32>
    %156 = arith.negf %155 : vector<2x32xf32>
    %157 = math.exp %156 : vector<2x32xf32>
    %cst_54 = arith.constant 1.000000e+00 : f32
    %158 = vector.broadcast %cst_54 : f32 to vector<2x32xf32>
    %159 = arith.addf %158, %157 : vector<2x32xf32>
    %160 = arith.divf %158, %159 : vector<2x32xf32>
    %161 = vector.extract_strided_slice %148 {offsets = [0, 64], sizes = [2, 32], strides = [1, 1]} : vector<2x128xf32> to vector<2x32xf32>
    %162 = math.tanh %161 : vector<2x32xf32>
    %163 = vector.extract_strided_slice %148 {offsets = [0, 96], sizes = [2, 32], strides = [1, 1]} : vector<2x128xf32> to vector<2x32xf32>
    %164 = arith.negf %163 : vector<2x32xf32>
    %165 = math.exp %164 : vector<2x32xf32>
    %cst_55 = arith.constant 1.000000e+00 : f32
    %166 = vector.broadcast %cst_55 : f32 to vector<2x32xf32>
    %167 = arith.addf %166, %165 : vector<2x32xf32>
    %168 = arith.divf %166, %167 : vector<2x32xf32>
    %169 = arith.mulf %160, %107 : vector<2x32xf32>
    %170 = arith.mulf %154, %162 : vector<2x32xf32>
    %171 = arith.addf %169, %170 : vector<2x32xf32>
    %172 = math.tanh %171 : vector<2x32xf32>
    %173 = arith.mulf %168, %172 : vector<2x32xf32>
    %c0_56 = arith.constant 0 : index
    %c0_57 = arith.constant 0 : index
    %174 = vector.load %arg11[%c0_56, %c0_57] : memref<2x64xf32, #tpu.memory_space<vmem>>, vector<2x32xf32>
    tpu.vector_store %arg11[%c0_56, %c0_57], %173 {strides = array<i32>} : memref<2x64xf32, #tpu.memory_space<vmem>>, vector<2x32xf32>,
    %c0_58 = arith.constant 0 : index
    %c32_59 = arith.constant 32 : index
    %175 = vector.load %arg11[%c0_58, %c32_59] : memref<2x64xf32, #tpu.memory_space<vmem>>, vector<2x32xf32>
    tpu.vector_store %arg11[%c0_58, %c32_59], %139 {strides = array<i32>} : memref<2x64xf32, #tpu.memory_space<vmem>>, vector<2x32xf32>,
    %c0_60 = arith.constant 0 : index
    %c0_61 = arith.constant 0 : index
    %176 = vector.load %arg11[%c0_60, %c0_61] : memref<2x64xf32, #tpu.memory_space<vmem>>, vector<2x64xf32>
    %cst_62 = arith.constant dense<0.000000e+00> : vector<2x128xf32>
    %177 = tpu.matmul %176, %4, %cst_62 {dimension_numbers = #tpu.dot_dimension_numbers<[1], [0], [0], [1], [0, 0, 1, 1], [], []>} : vector<2x64xf32>, vector<64x128xf32>, vector<2x128xf32> -> vector<2x128xf32>
    %178 = arith.addf %177, %7 : vector<2x128xf32>
    %179 = vector.extract_strided_slice %178 {offsets = [0, 0], sizes = [2, 32], strides = [1, 1]} : vector<2x128xf32> to vector<2x32xf32>
    %180 = arith.negf %179 : vector<2x32xf32>
    %181 = math.exp %180 : vector<2x32xf32>
    %cst_63 = arith.constant 1.000000e+00 : f32
    %182 = vector.broadcast %cst_63 : f32 to vector<2x32xf32>
    %183 = arith.addf %182, %181 : vector<2x32xf32>
    %184 = arith.divf %182, %183 : vector<2x32xf32>
    %185 = vector.extract_strided_slice %178 {offsets = [0, 32], sizes = [2, 32], strides = [1, 1]} : vector<2x128xf32> to vector<2x32xf32>
    %186 = arith.negf %185 : vector<2x32xf32>
    %187 = math.exp %186 : vector<2x32xf32>
    %cst_64 = arith.constant 1.000000e+00 : f32
    %188 = vector.broadcast %cst_64 : f32 to vector<2x32xf32>
    %189 = arith.addf %188, %187 : vector<2x32xf32>
    %190 = arith.divf %188, %189 : vector<2x32xf32>
    %191 = vector.extract_strided_slice %178 {offsets = [0, 64], sizes = [2, 32], strides = [1, 1]} : vector<2x128xf32> to vector<2x32xf32>
    %192 = math.tanh %191 : vector<2x32xf32>
    %193 = vector.extract_strided_slice %178 {offsets = [0, 96], sizes = [2, 32], strides = [1, 1]} : vector<2x128xf32> to vector<2x32xf32>
    %194 = arith.negf %193 : vector<2x32xf32>
    %195 = math.exp %194 : vector<2x32xf32>
    %cst_65 = arith.constant 1.000000e+00 : f32
    %196 = vector.broadcast %cst_65 : f32 to vector<2x32xf32>
    %197 = arith.addf %196, %195 : vector<2x32xf32>
    %198 = arith.divf %196, %197 : vector<2x32xf32>
    %199 = arith.mulf %190, %137 : vector<2x32xf32>
    %200 = arith.mulf %184, %192 : vector<2x32xf32>
    %201 = arith.addf %199, %200 : vector<2x32xf32>
    %202 = math.tanh %201 : vector<2x32xf32>
    %203 = arith.mulf %198, %202 : vector<2x32xf32>
    %204 = arith.index_cast %c2_i32 : i32 to index
    %c0_66 = arith.constant 0 : index
    %c0_67 = arith.constant 0 : index
    %205 = vector.load %arg7[%204, %c0_66, %c0_67] : memref<4x2x32xf32, #tpu.memory_space<vmem>>, vector<1x2x32xf32>
    %206 = vector.shape_cast %205 : vector<1x2x32xf32> to vector<2x32xf32>
    %207 = vector.shape_cast %203 : vector<2x32xf32> to vector<1x2x32xf32>
    tpu.vector_store %arg7[%204, %c0_66, %c0_67], %207 {strides = array<i32>} : memref<4x2x32xf32, #tpu.memory_space<vmem>>, vector<1x2x32xf32>,
    %c3_i32 = arith.constant 3 : i32
    %208 = arith.index_cast %c3_i32 : i32 to index
    %c0_68 = arith.constant 0 : index
    %c0_69 = arith.constant 0 : index
    %209 = vector.load %arg1[%208, %c0_68, %c0_69] : memref<4x2x128xf32, #tpu.memory_space<vmem>>, vector<1x2x128xf32>
    %210 = vector.shape_cast %209 : vector<1x2x128xf32> to vector<2x128xf32>
    %cst_70 = arith.constant dense<0.000000e+00> : vector<2x128xf32>
    %211 = tpu.matmul %173, %3, %cst_70 {dimension_numbers = #tpu.dot_dimension_numbers<[1], [0], [0], [1], [0, 0, 1, 1], [], []>} : vector<2x32xf32>, vector<32x128xf32>, vector<2x128xf32> -> vector<2x128xf32>
    %212 = arith.addf %210, %211 : vector<2x128xf32>
    %213 = vector.extract_strided_slice %212 {offsets = [0, 0], sizes = [2, 32], strides = [1, 1]} : vector<2x128xf32> to vector<2x32xf32>
    %214 = arith.negf %213 : vector<2x32xf32>
    %215 = math.exp %214 : vector<2x32xf32>
    %cst_71 = arith.constant 1.000000e+00 : f32
    %216 = vector.broadcast %cst_71 : f32 to vector<2x32xf32>
    %217 = arith.addf %216, %215 : vector<2x32xf32>
    %218 = arith.divf %216, %217 : vector<2x32xf32>
    %219 = vector.extract_strided_slice %212 {offsets = [0, 32], sizes = [2, 32], strides = [1, 1]} : vector<2x128xf32> to vector<2x32xf32>
    %220 = arith.negf %219 : vector<2x32xf32>
    %221 = math.exp %220 : vector<2x32xf32>
    %cst_72 = arith.constant 1.000000e+00 : f32
    %222 = vector.broadcast %cst_72 : f32 to vector<2x32xf32>
    %223 = arith.addf %222, %221 : vector<2x32xf32>
    %224 = arith.divf %222, %223 : vector<2x32xf32>
    %225 = vector.extract_strided_slice %212 {offsets = [0, 64], sizes = [2, 32], strides = [1, 1]} : vector<2x128xf32> to vector<2x32xf32>
    %226 = math.tanh %225 : vector<2x32xf32>
    %227 = vector.extract_strided_slice %212 {offsets = [0, 96], sizes = [2, 32], strides = [1, 1]} : vector<2x128xf32> to vector<2x32xf32>
    %228 = arith.negf %227 : vector<2x32xf32>
    %229 = math.exp %228 : vector<2x32xf32>
    %cst_73 = arith.constant 1.000000e+00 : f32
    %230 = vector.broadcast %cst_73 : f32 to vector<2x32xf32>
    %231 = arith.addf %230, %229 : vector<2x32xf32>
    %232 = arith.divf %230, %231 : vector<2x32xf32>
    %233 = arith.mulf %224, %171 : vector<2x32xf32>
    %234 = arith.mulf %218, %226 : vector<2x32xf32>
    %235 = arith.addf %233, %234 : vector<2x32xf32>
    %236 = math.tanh %235 : vector<2x32xf32>
    %237 = arith.mulf %232, %236 : vector<2x32xf32>
    %c0_74 = arith.constant 0 : index
    %c0_75 = arith.constant 0 : index
    %238 = vector.load %arg11[%c0_74, %c0_75] : memref<2x64xf32, #tpu.memory_space<vmem>>, vector<2x32xf32>
    tpu.vector_store %arg11[%c0_74, %c0_75], %237 {strides = array<i32>} : memref<2x64xf32, #tpu.memory_space<vmem>>, vector<2x32xf32>,
    %c0_76 = arith.constant 0 : index
    %c32_77 = arith.constant 32 : index
    %239 = vector.load %arg11[%c0_76, %c32_77] : memref<2x64xf32, #tpu.memory_space<vmem>>, vector<2x32xf32>
    tpu.vector_store %arg11[%c0_76, %c32_77], %203 {strides = array<i32>} : memref<2x64xf32, #tpu.memory_space<vmem>>, vector<2x32xf32>,
    %c0_78 = arith.constant 0 : index
    %c0_79 = arith.constant 0 : index
    %240 = vector.load %arg11[%c0_78, %c0_79] : memref<2x64xf32, #tpu.memory_space<vmem>>, vector<2x64xf32>
    %cst_80 = arith.constant dense<0.000000e+00> : vector<2x128xf32>
    %241 = tpu.matmul %240, %4, %cst_80 {dimension_numbers = #tpu.dot_dimension_numbers<[1], [0], [0], [1], [0, 0, 1, 1], [], []>} : vector<2x64xf32>, vector<64x128xf32>, vector<2x128xf32> -> vector<2x128xf32>
    %242 = arith.addf %241, %7 : vector<2x128xf32>
    %243 = vector.extract_strided_slice %242 {offsets = [0, 0], sizes = [2, 32], strides = [1, 1]} : vector<2x128xf32> to vector<2x32xf32>
    %244 = arith.negf %243 : vector<2x32xf32>
    %245 = math.exp %244 : vector<2x32xf32>
    %cst_81 = arith.constant 1.000000e+00 : f32
    %246 = vector.broadcast %cst_81 : f32 to vector<2x32xf32>
    %247 = arith.addf %246, %245 : vector<2x32xf32>
    %248 = arith.divf %246, %247 : vector<2x32xf32>
    %249 = vector.extract_strided_slice %242 {offsets = [0, 32], sizes = [2, 32], strides = [1, 1]} : vector<2x128xf32> to vector<2x32xf32>
    %250 = arith.negf %249 : vector<2x32xf32>
    %251 = math.exp %250 : vector<2x32xf32>
    %cst_82 = arith.constant 1.000000e+00 : f32
    %252 = vector.broadcast %cst_82 : f32 to vector<2x32xf32>
    %253 = arith.addf %252, %251 : vector<2x32xf32>
    %254 = arith.divf %252, %253 : vector<2x32xf32>
    %255 = vector.extract_strided_slice %242 {offsets = [0, 64], sizes = [2, 32], strides = [1, 1]} : vector<2x128xf32> to vector<2x32xf32>
    %256 = math.tanh %255 : vector<2x32xf32>
    %257 = vector.extract_strided_slice %242 {offsets = [0, 96], sizes = [2, 32], strides = [1, 1]} : vector<2x128xf32> to vector<2x32xf32>
    %258 = arith.negf %257 : vector<2x32xf32>
    %259 = math.exp %258 : vector<2x32xf32>
    %cst_83 = arith.constant 1.000000e+00 : f32
    %260 = vector.broadcast %cst_83 : f32 to vector<2x32xf32>
    %261 = arith.addf %260, %259 : vector<2x32xf32>
    %262 = arith.divf %260, %261 : vector<2x32xf32>
    %263 = arith.mulf %254, %201 : vector<2x32xf32>
    %264 = arith.mulf %248, %256 : vector<2x32xf32>
    %265 = arith.addf %263, %264 : vector<2x32xf32>
    %266 = math.tanh %265 : vector<2x32xf32>
    %267 = arith.mulf %262, %266 : vector<2x32xf32>
    %268 = arith.index_cast %c3_i32 : i32 to index
    %c0_84 = arith.constant 0 : index
    %c0_85 = arith.constant 0 : index
    %269 = vector.load %arg7[%268, %c0_84, %c0_85] : memref<4x2x32xf32, #tpu.memory_space<vmem>>, vector<1x2x32xf32>
    %270 = vector.shape_cast %269 : vector<1x2x32xf32> to vector<2x32xf32>
    %271 = vector.shape_cast %267 : vector<2x32xf32> to vector<1x2x32xf32>
    tpu.vector_store %arg7[%268, %c0_84, %c0_85], %271 {strides = array<i32>} : memref<4x2x32xf32, #tpu.memory_space<vmem>>, vector<1x2x32xf32>,
    %c4_i32 = arith.constant 4 : i32
    %c0_86 = arith.constant 0 : index
    %c0_87 = arith.constant 0 : index
    %c0_88 = arith.constant 0 : index
    %272 = vector.load %arg10[%c0_86, %c0_87, %c0_88] : memref<4x2x32xf32, #tpu.memory_space<vmem>>, vector<1x2x32xf32>
    %273 = vector.shape_cast %272 : vector<1x2x32xf32> to vector<2x32xf32>
    %274 = vector.shape_cast %237 : vector<2x32xf32> to vector<1x2x32xf32>
    tpu.vector_store %arg10[%c0_86, %c0_87, %c0_88], %274 {strides = array<i32>} : memref<4x2x32xf32, #tpu.memory_space<vmem>>, vector<1x2x32xf32>,
    %c1_89 = arith.constant 1 : index
    %c0_90 = arith.constant 0 : index
    %c0_91 = arith.constant 0 : index
    %275 = vector.load %arg10[%c1_89, %c0_90, %c0_91] : memref<4x2x32xf32, #tpu.memory_space<vmem>>, vector<1x2x32xf32>
    %276 = vector.shape_cast %275 : vector<1x2x32xf32> to vector<2x32xf32>
    %277 = vector.shape_cast %235 : vector<2x32xf32> to vector<1x2x32xf32>
    tpu.vector_store %arg10[%c1_89, %c0_90, %c0_91], %277 {strides = array<i32>} : memref<4x2x32xf32, #tpu.memory_space<vmem>>, vector<1x2x32xf32>,
    %c2_92 = arith.constant 2 : index
    %c0_93 = arith.constant 0 : index
    %c0_94 = arith.constant 0 : index
    %278 = vector.load %arg10[%c2_92, %c0_93, %c0_94] : memref<4x2x32xf32, #tpu.memory_space<vmem>>, vector<1x2x32xf32>
    %279 = vector.shape_cast %278 : vector<1x2x32xf32> to vector<2x32xf32>
    %280 = vector.shape_cast %267 : vector<2x32xf32> to vector<1x2x32xf32>
    tpu.vector_store %arg10[%c2_92, %c0_93, %c0_94], %280 {strides = array<i32>} : memref<4x2x32xf32, #tpu.memory_space<vmem>>, vector<1x2x32xf32>,
    %c3_95 = arith.constant 3 : index
    %c0_96 = arith.constant 0 : index
    %c0_97 = arith.constant 0 : index
    %281 = vector.load %arg10[%c3_95, %c0_96, %c0_97] : memref<4x2x32xf32, #tpu.memory_space<vmem>>, vector<1x2x32xf32>
    %282 = vector.shape_cast %281 : vector<1x2x32xf32> to vector<2x32xf32>
    %283 = vector.shape_cast %265 : vector<2x32xf32> to vector<1x2x32xf32>
    tpu.vector_store %arg10[%c3_95, %c0_96, %c0_97], %283 {strides = array<i32>} : memref<4x2x32xf32, #tpu.memory_space<vmem>>, vector<1x2x32xf32>,
    %c0_98 = arith.constant 0 : index
    %c0_99 = arith.constant 0 : index
    %c0_100 = arith.constant 0 : index
    %284 = vector.load %arg8[%c0_98, %c0_99, %c0_100] : memref<2x2x32xf32, #tpu.memory_space<vmem>>, vector<1x2x32xf32>
    %285 = vector.shape_cast %284 : vector<1x2x32xf32> to vector<2x32xf32>
    %286 = vector.shape_cast %237 : vector<2x32xf32> to vector<1x2x32xf32>
    tpu.vector_store %arg8[%c0_98, %c0_99, %c0_100], %286 {strides = array<i32>} : memref<2x2x32xf32, #tpu.memory_space<vmem>>, vector<1x2x32xf32>,
    %c1_101 = arith.constant 1 : index
    %c0_102 = arith.constant 0 : index
    %c0_103 = arith.constant 0 : index
    %287 = vector.load %arg8[%c1_101, %c0_102, %c0_103] : memref<2x2x32xf32, #tpu.memory_space<vmem>>, vector<1x2x32xf32>
    %288 = vector.shape_cast %287 : vector<1x2x32xf32> to vector<2x32xf32>
    %289 = vector.shape_cast %267 : vector<2x32xf32> to vector<1x2x32xf32>
    tpu.vector_store %arg8[%c1_101, %c0_102, %c0_103], %289 {strides = array<i32>} : memref<2x2x32xf32, #tpu.memory_space<vmem>>, vector<1x2x32xf32>,
    %c0_104 = arith.constant 0 : index
    %c0_105 = arith.constant 0 : index
    %c0_106 = arith.constant 0 : index
    %290 = vector.load %arg9[%c0_104, %c0_105, %c0_106] : memref<2x2x32xf32, #tpu.memory_space<vmem>>, vector<1x2x32xf32>
    %291 = vector.shape_cast %290 : vector<1x2x32xf32> to vector<2x32xf32>
    %292 = vector.shape_cast %235 : vector<2x32xf32> to vector<1x2x32xf32>
    tpu.vector_store %arg9[%c0_104, %c0_105, %c0_106], %292 {strides = array<i32>} : memref<2x2x32xf32, #tpu.memory_space<vmem>>, vector<1x2x32xf32>,
    %c1_107 = arith.constant 1 : index
    %c0_108 = arith.constant 0 : index
    %c0_109 = arith.constant 0 : index
    %293 = vector.load %arg9[%c1_107, %c0_108, %c0_109] : memref<2x2x32xf32, #tpu.memory_space<vmem>>, vector<1x2x32xf32>
    %294 = vector.shape_cast %293 : vector<1x2x32xf32> to vector<2x32xf32>
    %295 = vector.shape_cast %265 : vector<2x32xf32> to vector<1x2x32xf32>
    tpu.vector_store %arg9[%c1_107, %c0_108, %c0_109], %295 {strides = array<i32>} : memref<2x2x32xf32, #tpu.memory_space<vmem>>, vector<1x2x32xf32>,
    return
  }
  func.func @transform_0(%arg0: i32) -> (i32, i32, i32) {
    %c0_i32 = arith.constant 0 : i32
    %c0_i32_0 = arith.constant 0 : i32
    %c0_i32_1 = arith.constant 0 : i32
    return %arg0, %c0_i32, %c0_i32_0 : i32, i32, i32
  }
  func.func @transform_1(%arg0: i32) -> (i32, i32, i32) {
    %c0_i32 = arith.constant 0 : i32
    %c0_i32_0 = arith.constant 0 : i32
    %c0_i32_1 = arith.constant 0 : i32
    %c0_i32_2 = arith.constant 0 : i32
    return %c0_i32, %c0_i32_0, %c0_i32_1 : i32, i32, i32
  }
  func.func @transform_2(%arg0: i32) -> (i32, i32, i32) {
    %c0_i32 = arith.constant 0 : i32
    %c0_i32_0 = arith.constant 0 : i32
    %c0_i32_1 = arith.constant 0 : i32
    %c0_i32_2 = arith.constant 0 : i32
    return %c0_i32, %c0_i32_0, %c0_i32_1 : i32, i32, i32
  }
  func.func @transform_3(%arg0: i32) -> (i32, i32) {
    %c0_i32 = arith.constant 0 : i32
    %c0_i32_0 = arith.constant 0 : i32
    %c0_i32_1 = arith.constant 0 : i32
    return %c0_i32, %c0_i32_0 : i32, i32
  }
  func.func @transform_4(%arg0: i32) -> (i32, i32) {
    %c0_i32 = arith.constant 0 : i32
    %c0_i32_0 = arith.constant 0 : i32
    %c0_i32_1 = arith.constant 0 : i32
    return %c0_i32, %c0_i32_0 : i32, i32
  }
  func.func @transform_5(%arg0: i32) -> (i32, i32) {
    %c0_i32 = arith.constant 0 : i32
    %c0_i32_0 = arith.constant 0 : i32
    %c0_i32_1 = arith.constant 0 : i32
    return %c0_i32, %c0_i32_0 : i32, i32
  }
  func.func @transform_6(%arg0: i32) -> (i32, i32, i32) {
    %c0_i32 = arith.constant 0 : i32
    %c0_i32_0 = arith.constant 0 : i32
    %c0_i32_1 = arith.constant 0 : i32
    return %arg0, %c0_i32, %c0_i32_0 : i32, i32, i32
  }
  func.func @transform_7(%arg0: i32) -> (i32, i32, i32) {
    %c0_i32 = arith.constant 0 : i32
    %c0_i32_0 = arith.constant 0 : i32
    %c0_i32_1 = arith.constant 0 : i32
    %c0_i32_2 = arith.constant 0 : i32
    return %c0_i32, %c0_i32_0, %c0_i32_1 : i32, i32, i32
  }
  func.func @transform_8(%arg0: i32) -> (i32, i32, i32) {
    %c0_i32 = arith.constant 0 : i32
    %c0_i32_0 = arith.constant 0 : i32
    %c0_i32_1 = arith.constant 0 : i32
    %c0_i32_2 = arith.constant 0 : i32
    return %c0_i32, %c0_i32_0, %c0_i32_1 : i32, i32, i32
  }
}

</mosaic_0001>

<bundles_post_ra>
// kernel: latent_lstm_forward.1
= control target key start
LH: loop header
LB: loop body
LE: loop exit
PB: predicated region body
PF: predicated region fallthrough
CT: control target
= control target key end

     0   :  { %14 = vsyncpa [#allocation5], 0  ;;  %s2139_s0 = inlined_call_operand.vmem [shape: f32[8,2,128], index: 0, kind: input, shape index: {}]   ;;  %s2140_s1 = inlined_call_operand.vmem [shape: f32[2,2,32], index: 1, kind: input, shape index: {}, may-alias: {1,2}]   ;;  %s2141_s2 = inlined_call_operand.vmem [shape: f32[2,2,32], index: 2, kind: input, shape index: {}, may-alias: {1,2}]   ;;  %s2142_s3 = inlined_call_operand.vmem [shape: f32[32,128], index: 3, kind: input, shape index: {}]   ;;  %s2143_s4 = inlined_call_operand.vmem [shape: f32[64,128], index: 4, kind: input, shape index: {}]   ;;  %s2144_s5 = inlined_call_operand.vmem [shape: f32[1,128], index: 5, kind: input, shape index: {}]   ;;  %s2145_s6 = inlined_call_operand.vmem [shape: f32[8,2,32], index: 6, kind: output, shape index: {0}]   ;;  %s2146_s7 = inlined_call_operand.hbm [shape: f32[2,2,32], index: 7, kind: output, shape index: {1}]   ;;  %s2147_s8 = inlined_call_operand.hbm [shape: f32[2,2,32], index: 8, kind: output, shape index: {2}]  }
   0x1   :  { %15 = vsyncpa [#allocation7], 0  ;;  %s1838_s27 = smov 0  }
   0x2 LB: > { %s1844_s28 = sadd.s32 4294967295, %s1782_s27   ;;  %p1338_p0 = scmp.ge.s32.totalorder %s1782_s27, 1  ;;  %s1782_s27 = sphi %s1838_s27, %s21_s27  }
   0x3   : > { %p260_p1 = scmp.lt.s32.totalorder %s1782_s27, 3 }
   0x5   : > { %p261_p2 = pnand %p1338_p0, %p260_p1 }
   0x6   : > { %s1339_s29 = sshll.u32 (!%p261_p2), %s1844_s28, 2  ;;  %p1343_p4 = scmp.ne.s32.totalorder (!%p261_p2), %s1844_s28, 0 }
   0x7   : > { %264 = sbr.rel (%p261_p2) target bundleno = 3613 (0xe1d), region = 44  ;;  %p295_p3 = scmp.lt.s32.totalorder (!%p261_p2), %s1339_s29, 7 }
   0xe   : > { %s2149_s29 = smov (!%p295_p3, %s1339_s29), 7  ;;  %309 = sbr.rel (%p1343_p4) target bundleno = 21 (0x15), region = 48 }
   0xf   : > { %s1340_s30 = sshll.u32 %s2149_s29, 1  ;;  %v310_v0 = vld [vmem:[%s2140_s1] sm:$0x3] (!%p1343_p4)  ;;  %vm311_vm0 = vcmask (!%p1343_p4), 254976   ;;  %v1344_v2 = vld [vmem:[%s2140_s1 + $0x2] sm:$0x3] (!%p1343_p4) }
  0x10   : > { %s1852_s11 = scalar_lea.vmem %s2139_s0, %s1340_s30  ;;  %s1857_s14 = scalar_lea.vmem %s2145_s6, %s1340_s30  ;;  %v313_v1 = vld [vmem:[%s2141_s2] sm:$0x3] (!%p1343_p4)  ;;  %312 = vst.msk [vmem:[#allocation2] sm:$0x3] (!%p1343_p4), %vm311_vm0, %v310_v0  ;;  %v1345_v3 = vld [vmem:[%s2141_s2 + $0x2] sm:$0x3] (!%p1343_p4) }
  0x11   : > { %315 = vst.msk [vmem:[#allocation2 + $0x2] sm:$0x3] (!%p1343_p4), %vm311_vm0, %v313_v1  ;;  %319 = vst.msk [vmem:[#allocation2 + $0x4] sm:$0x3] (!%p1343_p4), %vm311_vm0, %v1344_v2 }
  0x12   : > { %323 = vst.msk [vmem:[#allocation2 + $0x6] sm:$0x3] (!%p1343_p4), %vm311_vm0, %v1345_v3 }
  0x15 PF: > { %v324_v4 = vld [vmem:[%s2142_s3] sm:$0xff]  ;;  %v325_v5 = vld [vmem:[%s2142_s3 + $0x8] sm:$0xff]  ;;  %v326_v6 = vld [vmem:[%s2142_s3 + $0x10] sm:$0xff]  ;;  %v1784_v7 = vmov 0.0|0.0   ;;  %vm1785_vm1 = vmmov 0   ;;  %v1786_v10 = vmov 0.0  }
  0x16   : > { %1551 = vmatprep.subr.bf16.mxu1 %v1784_v7  ;;  %v1882_v8 = vpack.c.bf16 %v325_v5, %v324_v4  ;;  %v327_v9 = vld [vmem:[%s2142_s3 + $0x18] sm:$0xff]  ;;  %1439 = vmatprep.mubr.msk.f32.mxu1 %vm1785_vm1, %v1786_v10  ;;  %vm351_vm2 = vcmask 261120   ;;  %v350_v13 = vld [vmem:[%s1852_s11] sm:$0x3]  ;;  %s1787_s12 = smov 64   ;;  %s1788_s13 = smov 32  }
  0x17   : > { %1569 = vmatprep.subr.bf16.mxu0 %v1784_v7  ;;  %1469 = vmatprep.mubr.msk.f32.mxu0 %vm1785_vm1, %v1786_v10  ;;  %v1893_v11 = vpack.c.bf16 %v327_v9, %v326_v6  ;;  %v343_v12 = vld [vmem:[#allocation2] sm:$0x3]  ;;  %v329_v30 = vld [vmem:[%s2143_s4 + $0x8] sm:$0xff]  ;;  %v330_v32 = vld [vmem:[%s2143_s4 + $0x10] sm:$0xff]  ;;  %vm458_vm3 = vcmask 254976   ;;  %vm464_vm4 = vcmask 517376  }
  0x18   : > { %1553 = vmatpush3.bf16.msra.mxu1 %v1882_v8  ;;  %1571 = vmatpush3.bf16.msra.mxu0 %v1882_v8  ;;  %v345_v18 = vld [vmem:[#allocation2 + $0x2] sm:$0x3]  ;;  %v331_v33 = vld [vmem:[%s2143_s4 + $0x18] sm:$0xff]  ;;  %v347_v36 = vld [vmem:[#allocation2 + $0x4] sm:$0x3]  ;;  %vm467_vm5 = vcmask 523264  }
  0x19   : > { %1554 = vmatprep.subr.bf16.mxu1 %v1784_v7  ;;  %1572 = vmatprep.subr.bf16.mxu0 %v1784_v7  ;;  %v328_v29 = vld [vmem:[%s2143_s4] sm:$0xff]  ;;  %v1927_v34 = vpack.c.bf16 %v331_v33, %v330_v32  ;;  %v333_v38 = vld [vmem:[%s2143_s4 + $0x28] sm:$0xff]  ;;  %v334_v40 = vld [vmem:[%s2143_s4 + $0x30] sm:$0xff]  ;;  %s1790_s17 = smov [#allocation4]   ;;  %p1631_p5 = scmp.eq.s32.totalorder %s1844_s28, 1 }
  0x1a   : > { %v1918_v31 = vpack.c.bf16 %v329_v30, %v328_v29  ;;  %v332_v37 = vld [vmem:[%s2143_s4 + $0x20] sm:$0xff]  ;;  %v335_v41 = vld [vmem:[%s2143_s4 + $0x38] sm:$0xff]  ;;  %s1243_s18 = sshll.u32 %s1790_s17, 4  ;;  %s1244_s18 = int_to_ptr.vmem [resolvable:$true] %s1243_s18 }
  0x1b   : > { %v1940_v39 = vpack.c.bf16 %v333_v38, %v332_v37  ;;  %v1949_v42 = vpack.c.bf16 %v335_v41, %v334_v40  ;;  %v1351_v48 = vld [vmem:[%s1852_s11 + $0x2] sm:$0x3]  ;;  %v1979_v52 = vld [vmem:[%s2144_s5] ss:$0 sm:$0xff]  ;;  %v349_v57 = vld [vmem:[#allocation2 + $0x6] sm:$0x3]  ;;  %p1723_p9 = scmp.lt.s32.totalorder %s1244_s18, %s1244_s18 }
  0x1c   : > { %1556 = vmatpush3.bf16.msra.mxu1 %v1893_v11  ;;  %1574 = vmatpush3.bf16.msra.mxu0 %v1893_v11  ;;  %s1716_s20 = scalar_lea.vmem %s1244_s18, 64 }
  0x1d   : > { %1557 = vmatprep.subr.bf16.mxu1 %v1784_v7  ;;  %1575 = vmatprep.subr.bf16.mxu0 %v1784_v7  ;;  %p1717_p6 = scmp.ne.s32.totalorder %s1244_s18, %s1716_s20  ;;  %p1724_p10 = scmp.lt.s32.totalorder %s1716_s20, %s1716_s20 }
  0x1f   : > { %1440 = vmatmul.mubr.msk.f32.vlgmr.msra.gmra.mrb[0].mxu1 %vm351_vm2, %v343_v12  ;;  %p1718_p7 = pnand %p1717_p6, %p1631_p5  ;;  %p1725_p11 = por %p1724_p10, %p1723_p9 }
  0x20   : > { %1458 = vmatprep.mubr.msk.f32.mxu1 %vm1785_vm1, %v1786_v10  ;;  %1559 = vmatpush3.bf16.msra.mxu1 %v1918_v31 }
  0x21   : > { %1560 = vmatprep.subr.bf16.mxu1 %v1784_v7  ;;  %p1719_p8 = pneg %p1718_p7 }
  0x23   : > { %p1726_p12 = pnand %p1725_p11, %p1719_p8 }
  0x24   : > { %1562 = vmatpush3.bf16.msra.mxu1 %v1927_v34 }
  0x25   : > { %1563 = vmatprep.subr.bf16.mxu1 %v1784_v7 }
  0x28   : > { %1565 = vmatpush3.bf16.msra.mxu1 %v1940_v39 }
  0x29   : > { %1566 = vmatprep.subr.bf16.mxu1 %v1784_v7 }
  0x2c   : > { %1568 = vmatpush3.bf16.msra.mxu1 %v1949_v42 }
  0x2d   : > { %1587 = vmatprep.subr.bf16.mxu1 %v1784_v7 }
  0xf2   : > { %v421_v14 = vpop.f32.mrb[0].mxu1 }
  0xf3   : > { %v425_v15 = vadd.f32 %v421_v14, %v350_v13  ;;  %v1441_v16 = vpop.f32.mrb[1].mxu1 }
  0xf5   : > { %1652 = vtanh.f32 %v425_v15  ;;  %v1348_v19 = vmul.f32 -1.442695, %v425_v15 }
  0xf7   : > { %1654 = vpow2.f32 %v1348_v19 }
  0xff   : > { %v1653_v17 = vpop.eup %1652 }
 0x100   : > { %439 = vrot.lane.b32.xlu0 %v1653_v17, %s1787_s12 }
 0x101   : > { %v1655_v20 = vpop.eup %1654 }
 0x102   : > { %v429_v21 = vadd.f32 1.0, %v1655_v20 }
 0x104   : > { %434 = vrot.lane.b32.xlu0 %v345_v18, %s1788_s13  ;;  %1656 = vrcp.f32 %v429_v21 }
 0x10e   : > { %v1657_v22 = vpop.eup %1656 }
 0x172   : > { %v440_v23 = vpop.permute.xlu0 %439 }
 0x173   : > { %v442_v24 = vmul.f32 %v1657_v22, %v440_v23 }
 0x175   : > { %444 = vrot.lane.b32.xlu1 %v442_v24, %s1788_s13 }
 0x176   : > { %v435_v25 = vpop.permute.xlu0 %434 }
 0x177   : > { %v437_v26 = vmul.f32 %v1657_v22, %v435_v25 }
 0x1e7   : > { %v445_v27 = vpop.permute.xlu1 %444 }
 0x1e8   : > { %v1909_v28 = vadd.f32 %v445_v27, %v437_v26  ;;  %v1357_v27 = vld [vmem:[%s1852_s11 + $0x4] sm:$0x3] }
 0x1ea   : > { %1658 = vtanh.f32 %v1909_v28 }
 0x1f4   : > { %v1659_v35 = vpop.eup %1658 }
 0x1f5   : > { %450 = vrot.lane.b32.xlu1 %v1659_v35, %s1787_s12 }
 0x1f9   : > { %461 = vrot.lane.b32.xlu1 %v347_v36, %s1788_s13 }
 0x267   : > { %v451_v43 = vpop.permute.xlu1 %450 }
 0x268   : > { %v453_v44 = vmul.f32 %v1657_v22, %v451_v43 }
 0x26a   : > { %455 = vrot.lane.b32.xlu0 %v453_v44, %s1788_s13 }
 0x26b   : > { %v462_v45 = vpop.permute.xlu1 %461 }
 0x2dc   : > { %v456_v46 = vpop.permute.xlu0 %455 }
 0x2dd   : > { %459 = vst.msk [vmem:[#allocation3] sm:$0x3] %vm458_vm3, %v456_v46  ;;  %1470 = vmatmul.mubr.msk.f32.vlgmr.msra.gmra.mrb[0].mxu0 %vm351_vm2, %v456_v46 }
 0x2de   : > { %465 = vst.msk [vmem:[#allocation3] sm:$0x3] %vm464_vm4, %v462_v45  ;;  %1577 = vmatpush3.bf16.msra.mxu0 %v1918_v31  ;;  %1488 = vmatprep.mubr.msk.f32.mxu0 %vm1785_vm1, %v1786_v10 }
 0x2df   : > { %1578 = vmatprep.subr.bf16.mxu0 %v1784_v7 }
 0x2e2   : > { %1580 = vmatpush3.bf16.msra.mxu0 %v1927_v34 }
 0x2e3   : > { %1581 = vmatprep.subr.bf16.mxu0 %v1784_v7 }
 0x2e5   : > { %v466_v47 = vld [vmem:[#allocation3] sm:$0x3] }
 0x2e6   : > { %1459 = vmatmul.mubr.msk.f32.vlgmr.msra.gmra.mrb[2].mxu1 %vm467_vm5, %v466_v47  ;;  %1583 = vmatpush3.bf16.msra.mxu0 %v1940_v39 }
 0x2e7   : > { %1589 = vmatpush3.bf16.msra.mxu1 %v1882_v8  ;;  %1499 = vmatprep.mubr.msk.f32.mxu1 %vm1785_vm1, %v1786_v10 }
 0x2e8   : > { %1590 = vmatprep.subr.bf16.mxu1 %v1784_v7  ;;  %1584 = vmatprep.subr.bf16.mxu0 %v1784_v7 }
 0x2ea   : > { %1586 = vmatpush3.bf16.msra.mxu0 %v1949_v42 }
 0x2eb   : > { %1592 = vmatpush3.bf16.msra.mxu1 %v1893_v11  ;;  %1605 = vmatprep.subr.bf16.mxu0 %v1784_v7 }
 0x2ec   : > { %1593 = vmatprep.subr.bf16.mxu1 %v1784_v7 }
 0x3b0   : > { %v644_v49 = vpop.f32.mrb[0].mxu0 }
 0x3b1   : > { %v648_v50 = vadd.f32 %v1351_v48, %v644_v49  ;;  %v1471_v51 = vpop.f32.mrb[1].mxu0 }
 0x3b3   : > { %1660 = vtanh.f32 %v648_v50  ;;  %v1353_v59 = vmul.f32 -1.442695, %v648_v50 }
 0x3b9   : > { %v537_v53 = vpop.f32.mrb[2].mxu1 }
 0x3ba   : > { %v538_v54 = vadd.f32 %v1979_v52, %v537_v53  ;;  %v1460_v55 = vpop.f32.mrb[3].mxu1 }
 0x3bc   : > { %1662 = vtanh.f32 %v538_v54  ;;  %v1350_v60 = vmul.f32 -1.442695, %v538_v54 }
 0x3bd   : > { %v1661_v56 = vpop.eup %1660  ;;  %1664 = vpow2.f32 %v1353_v59 }
 0x3be   : > { %658 = vrot.lane.b32.xlu0 %v1661_v56, %s1787_s12  ;;  %1666 = vpow2.f32 %v1350_v60 }
 0x3c2   : > { %549 = vrot.lane.b32.xlu0 %v349_v57, %s1788_s13 }
 0x3c6   : > { %v1663_v58 = vpop.eup %1662 }
 0x3c7   : > { %554 = vrot.lane.b32.xlu1 %v1663_v58, %s1787_s12  ;;  %v1665_v61 = vpop.eup %1664 }
 0x3c8   : > { %v652_v62 = vadd.f32 1.0, %v1665_v61  ;;  %v1667_v63 = vpop.eup %1666 }
 0x3c9   : > { %v544_v0 = vadd.f32 1.0, %v1667_v63 }
 0x3ca   : > { %1668 = vrcp.f32 %v652_v62 }
 0x3cb   : > { %1670 = vrcp.f32 %v544_v0 }
 0x3d4   : > { %v1669_v1 = vpop.eup %1668 }
 0x3d5   : > { %v1671_v4 = vpop.eup %1670  ;;  %v656_v9 = vmul.f32 %v1669_v1, %v1909_v28 }
 0x430   : > { %v659_v2 = vpop.permute.xlu0 %658 }
 0x431   : > { %v661_v3 = vmul.f32 %v1669_v1, %v659_v2 }
 0x433   : > { %663 = vrot.lane.b32.xlu1 %v661_v3, %s1788_s13 }
 0x434   : > { %v550_v14 = vpop.permute.xlu0 %549 }
 0x435   : > { %v552_v15 = vmul.f32 %v1671_v4, %v550_v14 }
 0x439   : > { %v555_v5 = vpop.permute.xlu1 %554 }
 0x43a   : > { %v557_v6 = vmul.f32 %v1671_v4, %v555_v5 }
 0x43c   : > { %559 = vrot.lane.b32.xlu0 %v557_v6, %s1788_s13 }
 0x4a5   : > { %v664_v12 = vpop.permute.xlu1 %663 }
 0x4a6   : > { %v1988_v13 = vadd.f32 %v664_v12, %v656_v9 }
 0x4a8   : > { %1672 = vtanh.f32 %v1988_v13 }
 0x4ae   : > { %v560_v16 = vpop.permute.xlu0 %559 }
 0x4af   : > { %v1991_v17 = vadd.f32 %v560_v16, %v552_v15 }
 0x4b1   : > { %1674 = vtanh.f32 %v1991_v17 }
 0x4b2   : > { %v1673_v18 = vpop.eup %1672 }
 0x4b3   : > { %669 = vrot.lane.b32.xlu1 %v1673_v18, %s1787_s12 }
 0x4bb   : > { %v1675_v19 = vpop.eup %1674 }
 0x4bc   : > { %565 = vrot.lane.b32.xlu0 %v1675_v19, %s1787_s12 }
 0x525   : > { %v670_v20 = vpop.permute.xlu1 %669 }
 0x526   : > { %v672_v21 = vmul.f32 %v1669_v1, %v670_v20 }
 0x528   : > { %674 = vrot.lane.b32.xlu1 %v672_v21, %s1788_s13 }
 0x52e   : > { %v566_v22 = vpop.permute.xlu0 %565 }
 0x52f   : > { %v1997_v23 = vmul.f32 %v1671_v4, %v566_v22 }
 0x531   : > { %678 = vrot.lane.b32.xlu0 %v1997_v23, %s1787_s12 }
 0x59a   : > { %v675_v24 = vpop.permute.xlu1 %674 }
 0x59b   : > { %677 = vst.msk [vmem:[#allocation3] sm:$0x3] %vm458_vm3, %v675_v24  ;;  %1500 = vmatmul.mubr.msk.f32.vlgmr.msra.gmra.mrb[4].mxu1 %vm351_vm2, %v675_v24 }
 0x59c   : > { %1595 = vmatpush3.bf16.msra.mxu1 %v1918_v31  ;;  %1518 = vmatprep.mubr.msk.f32.mxu1 %vm1785_vm1, %v1786_v10 }
 0x59d   : > { %1596 = vmatprep.subr.bf16.mxu1 %v1784_v7 }
 0x5a0   : > { %1598 = vmatpush3.bf16.msra.mxu1 %v1927_v34 }
 0x5a1   : > { %1599 = vmatprep.subr.bf16.mxu1 %v1784_v7 }
 0x5a3   : > { %v679_v25 = vpop.permute.xlu0 %678 }
 0x5a4   : > { %681 = vst.msk [vmem:[#allocation3] sm:$0x3] %vm464_vm4, %v679_v25  ;;  %1601 = vmatpush3.bf16.msra.mxu1 %v1940_v39 }
 0x5a5   : > { %1602 = vmatprep.subr.bf16.mxu1 %v1784_v7 }
 0x5a8   : > { %1604 = vmatpush3.bf16.msra.mxu1 %v1949_v42 }
 0x5ab   : > { %v682_v26 = vld [vmem:[#allocation3] sm:$0x3] }
 0x5ac   : > { %1489 = vmatmul.mubr.msk.f32.vlgmr.msra.gmra.mrb[2].mxu0 %vm467_vm5, %v682_v26 }
 0x5ad   : > { %1607 = vmatpush3.bf16.msra.mxu0 %v1882_v8  ;;  %1529 = vmatprep.mubr.msk.f32.mxu0 %vm1785_vm1, %v1786_v10 }
 0x5ae   : > { %1608 = vmatprep.subr.bf16.mxu0 %v1784_v7 }
 0x5b1   : > { %1610 = vmatpush3.bf16.msra.mxu0 %v1893_v11 }
 0x5b2   : > { %1611 = vmatprep.subr.bf16.mxu0 %v1784_v7 }
 0x66e   : > { %v856_v28 = vpop.f32.mrb[4].mxu1 }
 0x66f   : > { %v860_v29 = vadd.f32 %v1357_v27, %v856_v28  ;;  %v1501_v30 = vpop.f32.mrb[5].mxu1 }
 0x671   : > { %1676 = vtanh.f32 %v860_v29  ;;  %v1359_v37 = vmul.f32 -1.442695, %v860_v29 }
 0x67b   : > { %v1677_v32 = vpop.eup %1676 }
 0x67c   : > { %870 = vrot.lane.b32.xlu1 %v1677_v32, %s1787_s12 }
 0x67f   : > { %v752_v33 = vpop.f32.mrb[2].mxu0 }
 0x680   : > { %v753_v8 = vadd.f32 %v1979_v52, %v752_v33  ;;  %v1490_v35 = vpop.f32.mrb[3].mxu0 }
 0x682   : > { %1678 = vtanh.f32 %v753_v8  ;;  %v1355_v40 = vmul.f32 -1.442695, %v753_v8 }
 0x683   : > { %1680 = vpow2.f32 %v1359_v37 }
 0x68c   : > { %v1679_v36 = vpop.eup %1678 }
 0x68d   : > { %765 = vrot.lane.b32.xlu0 %v1679_v36, %s1787_s12  ;;  %v1681_v11 = vpop.eup %1680 }
 0x68e   : > { %v864_v38 = vadd.f32 1.0, %v1681_v11 }
 0x690   : > { %1682 = vrcp.f32 %v864_v38 }
 0x691   : > { %1684 = vpow2.f32 %v1355_v40 }
 0x69a   : > { %v1683_v41 = vpop.eup %1682 }
 0x69b   : > { %v1685_v43 = vpop.eup %1684  ;;  %v868_v50 = vmul.f32 %v1683_v41, %v1988_v13 }
 0x69c   : > { %v759_v46 = vadd.f32 1.0, %v1685_v43 }
 0x69e   : > { %1686 = vrcp.f32 %v759_v46 }
 0x6a8   : > { %v1687_v47 = vpop.eup %1686 }
 0x6a9   : > { %v763_v55 = vmul.f32 %v1687_v47, %v1991_v17 }
 0x6ee   : > { %v871_v44 = vpop.permute.xlu1 %870 }
 0x6ef   : > { %v873_v45 = vmul.f32 %v1683_v41, %v871_v44 }
 0x6f1   : > { %875 = vrot.lane.b32.xlu1 %v873_v45, %s1788_s13 }
 0x6ff   : > { %v766_v48 = vpop.permute.xlu0 %765 }
 0x700   : > { %v768_v49 = vmul.f32 %v1687_v47, %v766_v48 }
 0x702   : > { %770 = vrot.lane.b32.xlu0 %v768_v49, %s1788_s13 }
 0x763   : > { %v876_v51 = vpop.permute.xlu1 %875 }
 0x764   : > { %v878_v53 = vadd.f32 %v876_v51, %v868_v50 }
 0x766   : > { %1688 = vtanh.f32 %v878_v53 }
 0x770   : > { %v1689_v54 = vpop.eup %1688 }
 0x771   : > { %881 = vrot.lane.b32.xlu1 %v1689_v54, %s1787_s12 }
 0x774   : > { %v771_v56 = vpop.permute.xlu0 %770 }
 0x775   : > { %v773_v57 = vadd.f32 %v771_v56, %v763_v55 }
 0x777   : > { %1690 = vtanh.f32 %v773_v57 }
 0x781   : > { %v1691_v58 = vpop.eup %1690 }
 0x782   : > { %776 = vrot.lane.b32.xlu0 %v1691_v58, %s1787_s12 }
 0x7e3   : > { %v882_v59 = vpop.permute.xlu1 %881 }
 0x7e4   : > { %v884_v60 = vmul.f32 %v1683_v41, %v882_v59 }
 0x7e6   : > { %886 = vrot.lane.b32.xlu1 %v884_v60, %s1788_s13 }
 0x7f4   : > { %v777_v61 = vpop.permute.xlu0 %776 }
 0x7f5   : > { %v2031_v62 = vmul.f32 %v1687_v47, %v777_v61 }
 0x7f7   : > { %890 = vrot.lane.b32.xlu0 %v2031_v62, %s1787_s12 }
 0x858   : > { %v887_v63 = vpop.permute.xlu1 %886 }
 0x859   : > { %889 = vst.msk [vmem:[#allocation3] sm:$0x3] %vm458_vm3, %v887_v63  ;;  %1530 = vmatmul.mubr.msk.f32.vlgmr.msra.gmra.mrb[4].mxu0 %vm351_vm2, %v887_v63 }
 0x85a   : > { %1613 = vmatpush3.bf16.msra.mxu0 %v1918_v31  ;;  %1548 = vmatprep.mubr.msk.f32.mxu0 %vm1785_vm1, %v1786_v10  ;;  %v1363_v31 = vld [vmem:[%s1852_s11 + $0x6] sm:$0x3]  ;;  %s1789_s11 = smov 96  }
 0x85b   : > { %1614 = vmatprep.subr.bf16.mxu0 %v1784_v7 }
 0x85e   : > { %1616 = vmatpush3.bf16.msra.mxu0 %v1927_v34 }
 0x85f   : > { %1617 = vmatprep.subr.bf16.mxu0 %v1784_v7 }
 0x862   : > { %1619 = vmatpush3.bf16.msra.mxu0 %v1940_v39 }
 0x863   : > { %1620 = vmatprep.subr.bf16.mxu0 %v1784_v7 }
 0x866   : > { %1622 = vmatpush3.bf16.msra.mxu0 %v1949_v42 }
 0x869   : > { %v891_v0 = vpop.permute.xlu0 %890 }
 0x86a   : > { %893 = vst.msk [vmem:[#allocation3] sm:$0x3] %vm464_vm4, %v891_v0 }
 0x871   : > { %v894_v1 = vld [vmem:[#allocation3] sm:$0x3] }
 0x872   : > { %1519 = vmatmul.mubr.msk.f32.vlgmr.msra.gmra.mrb[6].mxu1 %vm467_vm5, %v894_v1 }
 0x92c   : > { %v1068_v10 = vpop.f32.mrb[4].mxu0 }
 0x92d   : > { %v1072_v2 = vadd.f32 %v1363_v31, %v1068_v10  ;;  %v1531_v3 = vpop.f32.mrb[5].mxu0 }
 0x92f   : > { %1692 = vtanh.f32 %v1072_v2  ;;  %v1365_v5 = vmul.f32 -1.442695, %v1072_v2 }
 0x939   : > { %v1693_v34 = vpop.eup %1692 }
 0x93a   : > { %1082 = vrot.lane.b32.xlu1 %v1693_v34, %s1787_s12 }
 0x945   : > { %v964_v4 = vpop.f32.mrb[6].mxu1 }
 0x946   : > { %v965_v39 = vadd.f32 %v1979_v52, %v964_v4  ;;  %v1520_v7 = vpop.f32.mrb[7].mxu1 }
 0x948   : > { %1694 = vtanh.f32 %v965_v39  ;;  %v1361_v12 = vmul.f32 -1.442695, %v965_v39 }
 0x949   : > { %1696 = vpow2.f32 %v1365_v5 }
 0x952   : > { %v1695_v42 = vpop.eup %1694 }
 0x953   : > { %977 = vrot.lane.b32.xlu0 %v1695_v42, %s1787_s12  ;;  %v1697_v6 = vpop.eup %1696 }
 0x954   : > { %v1076_v9 = vadd.f32 1.0, %v1697_v6 }
 0x956   : > { %1698 = vrcp.f32 %v1076_v9 }
 0x957   : > { %1700 = vpow2.f32 %v1361_v12 }
 0x960   : > { %v1699_v13 = vpop.eup %1698 }
 0x961   : > { %v1701_v16 = vpop.eup %1700  ;;  %v1080_v21 = vmul.f32 %v1699_v13, %v878_v53 }
 0x962   : > { %v971_v17 = vadd.f32 1.0, %v1701_v16 }
 0x964   : > { %1702 = vrcp.f32 %v971_v17 }
 0x96e   : > { %v1703_v18 = vpop.eup %1702 }
 0x96f   : > { %v975_v26 = vmul.f32 %v1703_v18, %v773_v57 }
 0x9ac   : > { %v1083_v14 = vpop.permute.xlu1 %1082 }
 0x9ad   : > { %v1085_v15 = vmul.f32 %v1699_v13, %v1083_v14 }
 0x9af   : > { %1087 = vrot.lane.b32.xlu1 %v1085_v15, %s1788_s13 }
 0x9c5   : > { %v978_v19 = vpop.permute.xlu0 %977 }
 0x9c6   : > { %v980_v20 = vmul.f32 %v1703_v18, %v978_v19 }
 0x9c8   : > { %982 = vrot.lane.b32.xlu0 %v980_v20, %s1788_s13 }
 0xa21   : > { %v1088_v22 = vpop.permute.xlu1 %1087 }
 0xa22   : > { %v1090_v24 = vadd.f32 %v1088_v22, %v1080_v21 }
 0xa24   : > { %1704 = vtanh.f32 %v1090_v24 }
 0xa2e   : > { %v1705_v25 = vpop.eup %1704 }
 0xa2f   : > { %1093 = vrot.lane.b32.xlu1 %v1705_v25, %s1787_s12 }
 0xa3a   : > { %v983_v27 = vpop.permute.xlu0 %982 }
 0xa3b   : > { %v985_v28 = vadd.f32 %v983_v27, %v975_v26 }
 0xa3d   : > { %1706 = vtanh.f32 %v985_v28 }
 0xa47   : > { %v1707_v29 = vpop.eup %1706 }
 0xa48   : > { %988 = vrot.lane.b32.xlu0 %v1707_v29, %s1787_s12 }
 0xaa1   : > { %v1094_v30 = vpop.permute.xlu1 %1093 }
 0xaa2   : > { %v1096_v32 = vmul.f32 %v1699_v13, %v1094_v30 }
 0xaa4   : > { %1098 = vrot.lane.b32.xlu1 %v1096_v32, %s1788_s13 }
 0xaba   : > { %v989_v33 = vpop.permute.xlu0 %988 }
 0xabb   : > { %v991_v8 = vmul.f32 %v1703_v18, %v989_v33 }
 0xabd   : > { %1102 = vrot.lane.b32.xlu0 %v991_v8, %s1787_s12 }
 0xb16   : > { %v1099_v35 = vpop.permute.xlu1 %1098 }
 0xb17   : > { %1101 = vst.msk [vmem:[#allocation3] sm:$0x3] %vm458_vm3, %v1099_v35  ;;  %1210 = vst.msk [vmem:[#allocation2] sm:$0x3] %vm458_vm3, %v1099_v35 }
 0xb18   : > { %1222 = vst.msk [vmem:[#allocation4] sm:$0x3] %vm458_vm3, %v1099_v35 }
 0xb2f   : > { %v1103_v36 = vpop.permute.xlu0 %1102 }
 0xb30   : > { %1105 = vst.msk [vmem:[#allocation3] sm:$0x3] %vm464_vm4, %v1103_v36 }
 0xb37   : > { %v1106_v37 = vld [vmem:[#allocation3] sm:$0x3] }
 0xb38   : > { %1549 = vmatmul.mubr.msk.f32.vlgmr.msra.gmra.mrb[6].mxu0 %vm467_vm5, %v1106_v37 }
 0xc0b   : > { %v1176_v11 = vpop.f32.mrb[6].mxu0 }
 0xc0c   : > { %v1177_v38 = vadd.f32 %v1979_v52, %v1176_v11  ;;  %v1550_v40 = vpop.f32.mrb[7].mxu0 }
 0xc0e   : > { %1708 = vtanh.f32 %v1177_v38  ;;  %v1367_v43 = vmul.f32 -1.442695, %v1177_v38 }
 0xc10   : > { %1710 = vpow2.f32 %v1367_v43 }
 0xc18   : > { %v1709_v41 = vpop.eup %1708 }
 0xc19   : > { %1189 = vrot.lane.b32.xlu1 %v1709_v41, %s1787_s12 }
 0xc1a   : > { %v1711_v44 = vpop.eup %1710 }
 0xc1b   : > { %v1183_v45 = vadd.f32 1.0, %v1711_v44 }
 0xc1d   : > { %1712 = vrcp.f32 %v1183_v45 }
 0xc27   : > { %v1713_v46 = vpop.eup %1712 }
 0xc28   : > { %v1187_v52 = vmul.f32 %v1713_v46, %v985_v28 }
 0xc8b   : > { %v1190_v47 = vpop.permute.xlu1 %1189 }
 0xc8c   : > { %v1192_v48 = vmul.f32 %v1713_v46, %v1190_v47 }
 0xc8e   : > { %1194 = vrot.lane.b32.xlu0 %v1192_v48, %s1788_s13 }
 0xc92   : > { %570 = vrot.lane.b32.xlu0 %v1997_v23, %s1788_s13 }
 0xc96   : > { %993 = vrot.lane.b32.xlu0 %v991_v8, %s1788_s13 }
 0xc9a   : > { %1212 = vrot.lane.b32.xlu0 %v1090_v24, %s1789_s11 }
 0xd00   : > { %v1195_v49 = vpop.permute.xlu0 %1194 }
 0xd01   : > { %v1197_v50 = vadd.f32 %v1195_v49, %v1187_v52 }
 0xd03   : > { %1714 = vtanh.f32 %v1197_v50 }
 0xd04   : > { %v571_v51 = vpop.permute.xlu0 %570 }
 0xd05   : > { %573 = vst.msk [vmem:[%s1857_s14] sm:$0x3] %vm458_vm3, %v571_v51 }
 0xd08   : > { %v994_v53 = vpop.permute.xlu0 %993 }
 0xd09   : > { %1362 = vst.msk [vmem:[%s1857_s14 + $0x4] sm:$0x3] %vm458_vm3, %v994_v53 }
 0xd0c   : > { %v1213_v54 = vpop.permute.xlu0 %1212 }
 0xd0d   : > { %v1715_v55 = vpop.eup %1714  ;;  %1215 = vst.msk [vmem:[#allocation2 + $0x2] sm:$0x3] %vm458_vm3, %v1213_v54  ;;  %1225 = vst.msk [vmem:[#allocation6] sm:$0x3] %vm458_vm3, %v1213_v54 }
 0xd0e   : > { %1200 = vrot.lane.b32.xlu1 %v1715_v55, %s1787_s12  ;;  %s1791_s12 = smov [#allocation6]  }
 0xd0f   : > { %s1256_s19 = sshll.u32 %s1791_s12, 4  ;;  %s1257_s19 = int_to_ptr.vmem [resolvable:$true] %s1256_s19 }
 0xd12   : > { %781 = vrot.lane.b32.xlu1 %v2031_v62, %s1788_s13 }
 0xd80   : > { %v1201_v23 = vpop.permute.xlu1 %1200 }
 0xd81   : > { %v1203_v56 = vmul.f32 %v1713_v46, %v1201_v23 }
 0xd83   : > { %1205 = vrot.lane.b32.xlu1 %v1203_v56, %s1788_s13 }
 0xd84   : > { %v782_v57 = vpop.permute.xlu1 %781 }
 0xd85   : > { %1356 = vst.msk [vmem:[%s1857_s14 + $0x2] sm:$0x3] %vm458_vm3, %v782_v57 }
 0xd87   : > { %1218 = vrot.lane.b32.xlu1 %v1197_v50, %s1789_s11 }
 0xdf5   : > { %v1206_v58 = vpop.permute.xlu1 %1205 }
 0xdf6   : > { %1368 = vst.msk [vmem:[%s1857_s14 + $0x6] sm:$0x3] %vm458_vm3, %v1206_v58  ;;  %1216 = vst.msk [vmem:[#allocation2 + $0x4] sm:$0x3] %vm458_vm3, %v1206_v58 }
 0xdf7   : > { %1224 = vst.msk [vmem:[#allocation4 + $0x2] sm:$0x3] %vm458_vm3, %v1206_v58 }
 0xdf8   : > { %1729 = shalt.err (!%p1726_p12)
}
 0xdf9   : > { %s1730_s23 = scalar_lea.hbm %s2146_s7, 64 }
 0xdfa   : > { %p1731_p13 = scmp.ne.s32.totalorder %s2146_s7, %s1730_s23  ;;  %p1736_p2 = scmp.lt.u32.totalorder %s1730_s23, %s2146_s7 }
 0xdfc   : > { %p1732_p0 = pnand %p1731_p13, %p1631_p5 }
 0xdfe   : > { %p1733_p1 = pneg %p1732_p0 }
 0xe00   : > { %p1738_p3 = pnand %p1736_p2, %p1733_p1 }
 0xe02   : > { %1741 = shalt.err (!%p1738_p3)
}
 0xe03   : > { %s1792_s29 = smov 2   ;;  %v1219_v59 = vpop.permute.xlu1 %1218  ;;  %s1742_s10 = scalar_lea.vmem %s1257_s19, 64 }
 0xe04   : > { %1624 = dma.vmem_to_hbm [thread:$0]  (%p1631_p5), %s1244_s18, 64, %s2146_s7, [#allocation5], %s1788_s13, %s1788_s13, %s1792_s29   ;;  %1221 = vst.msk [vmem:[#allocation2 + $0x6] sm:$0x3] %vm458_vm3, %v1219_v59  ;;  %1227 = vst.msk [vmem:[#allocation6 + $0x2] sm:$0x3] %vm458_vm3, %v1219_v59 }
 0xe05   : > { %p1743_p4 = scmp.ne.s32.totalorder %s1257_s19, %s1742_s10  ;;  %p1749_p8 = scmp.lt.s32.totalorder %s1257_s19, %s1257_s19 }
 0xe06   : > { %p1750_p9 = scmp.lt.s32.totalorder %s1742_s10, %s1742_s10 }
 0xe07   : > { %p1744_p6 = pnand %p1743_p4, %p1631_p5 }
 0xe08   : > { %p1751_p10 = por %p1750_p9, %p1749_p8 }
 0xe09   : > { %p1745_p7 = pneg %p1744_p6 }
 0xe0b   : > { %p1752_p11 = pnand %p1751_p10, %p1745_p7 }
 0xe0d   : > { %1755 = shalt.err (!%p1752_p11)
}
 0xe0e   : > { %s1756_s11 = scalar_lea.hbm %s2147_s8, 64 }
 0xe0f   : > { %p1757_p12 = scmp.ne.s32.totalorder %s2147_s8, %s1756_s11  ;;  %p1762_p1 = scmp.lt.u32.totalorder %s1756_s11, %s2147_s8 }
 0xe11   : > { %p1758_p13 = pnand %p1757_p12, %p1631_p5 }
 0xe13   : > { %p1759_p0 = pneg %p1758_p13 }
 0xe15   : > { %p1764_p2 = pnand %p1762_p1, %p1759_p0 }
 0xe17   : > { %1767 = shalt.err (!%p1764_p2)
}
 0xe18   : > { %1626 = dma.vmem_to_hbm [thread:$0]  (%p1631_p5), %s1257_s19, 64, %s2147_s8, [#allocation7], %s1788_s13, %s1788_s13, %s1792_s29  }
 0xe19   : > { %1773 = dma.done.wait (%p1631_p5), [#allocation5], 64  }
 0xe1a   : > { %1775 = vsyncadd (%p1631_p5), [#allocation5], 4294967232 }
 0xe1b   : > { %1777 = dma.done.wait (%p1631_p5), [#allocation7], 64  }
 0xe1c   : > { %1779 = vsyncadd (%p1631_p5), [#allocation7], 4294967232 }
 0xe1d PF: > { %s21_s27 = sadd.s32 1, %s1782_s27  }
 0xe1e   : > { %p18_p3 = scmp.ge.s32.totalorder %s21_s27, 4  }
 0xe20   :  { %20 = sbr.rel (!%p18_p3) target bundleno = 2 (0x2), region = 111 }
 0xe27   :  { %1284 = vsyncpa [#allocation5], 1 }
 0xe28   :  { %1286 = vsyncpa [#allocation5 + $0x1], 1 }
 0xe29   :  { %1287 = vsyncpa [#allocation7], 1 }

</bundles_post_ra>
